<compile_context>
chip_gen: v7x
topology: tpu7x:2x2x1
jax: 0.10.0
libtpu: 0.0.40
codegen_flags: <defaults>
</compile_context>

<pallas_src>
import functools

import jax
import jax.numpy as jnp
from jax.experimental import pallas as pl
from jax.experimental.pallas import tpu as pltpu


# ----------------------------------------------------------------------------
# Kernel 1: fused Linear + (optional) GELU     y = gelu(x @ w + b)
#   bf16 MXU operands, f32 accumulation + f32 epilogue; tiled over M (parallel grid)
# ----------------------------------------------------------------------------
def _linear_act_kernel(x_ref, w_ref, b_ref, o_ref, *, apply_gelu):
    x = x_ref[...].astype(jnp.bfloat16)          # (tm, K)
    w = w_ref[...].astype(jnp.bfloat16)          # (K, N)
    b = b_ref[...].astype(jnp.float32)           # (1, N)
    y = jnp.dot(x, w, preferred_element_type=jnp.float32) + b
    if apply_gelu:
        # TODO(synk): nn.GELU default is exact erf; tanh approximation used (TPU EUP friendly).
        c = 0.7978845608028654  # sqrt(2/pi)
        y = 0.5 * y * (1.0 + jnp.tanh(c * (y + 0.044715 * y * y * y)))
    o_ref[...] = y.astype(o_ref.dtype)


def linear_act(x, w, b, *, apply_gelu, tm=256):
    M, K = x.shape
    N = w.shape[1]
    if M <= tm:
        blk_m, Mp, xp = M, M, x
    else:
        blk_m = tm
        Mp = pl.cdiv(M, tm) * tm
        xp = jnp.pad(x, ((0, Mp - M), (0, 0))) if Mp != M else x
    grid_m = Mp // blk_m
    kernel = functools.partial(_linear_act_kernel, apply_gelu=apply_gelu)
    out = pl.pallas_call(
        kernel,
        out_shape=jax.ShapeDtypeStruct((Mp, N), jnp.float32),
        grid=(grid_m,),
        in_specs=[
            pl.BlockSpec((blk_m, K), lambda i: (i, 0)),
            pl.BlockSpec((K, N), lambda i: (0, 0)),
            pl.BlockSpec((1, N), lambda i: (0, 0)),
        ],
        out_specs=pl.BlockSpec((blk_m, N), lambda i: (i, 0)),
        compiler_params=pltpu.CompilerParams(dimension_semantics=("parallel",)),
    )(xp, w, b)
    return out[:M]


# ----------------------------------------------------------------------------
# Kernel 2: fused GAT stack (all layers) + cosine similarity + (x+1)/2
#   per graph g (grid over batch):
#     for each layer:  z = h @ W
#                      d = z @ A_dst   (N, H)   dst scores, all heads, one matmul
#                      r = A_src @ z^T (H, N)   src scores, all heads, one matmul
#                      e_h[i,j] = LeakyReLU(d[i,h] + r[h,j]) + mask_bias[i,j]
#                      alpha_h  = softmax_j(e_h)
#                      h <- sum_h alpha_h @ (z * lane_mask_h) + bias    (+ ELU between layers)
#     logits[g, :] = (cos(sent_proj[g], h) + 1) / 2    (lane-dense (1, N) row)
# ----------------------------------------------------------------------------
def _gat_stack_cosine_kernel(h_ref, adj_ref, sent_ref, w_ref, adst_ref, asrc_ref,
                             b_ref, o_ref, *, n_layers, n_heads, head_dim,
                             neg_slope=0.2, eps=1e-8):
    f32 = jnp.float32
    bf16 = jnp.bfloat16
    dn = (((1,), (1,)), ((), ()))                       # contract last dims (A @ B^T)
    d_out = n_heads * head_dim

    h = h_ref[0].astype(f32)                            # (N, D)

    # Edge-mask bias: computed ONCE per graph, reused across all layers and heads.
    adj = adj_ref[0].astype(f32)                        # (N, N) (DMA'd as int8)
    mask_bias = jnp.where(adj > 0, 0.0, -1e30)          # (N, N) f32

    # Per-head lane masks (hoisted out of the layer loop): keep all ops lane-dense,
    # no lane-offset column slicing of z and no per-head concatenation.
    lane = jax.lax.broadcasted_iota(jnp.int32, (1, d_out), 1)
    head_masks = [
        ((lane >= hh * head_dim) & (lane < (hh + 1) * head_dim)).astype(f32)
        for hh in range(n_heads)
    ]

    for li in range(n_layers):
        w = w_ref[li].astype(bf16)                      # (D, D_out)
        adst = adst_ref[li].astype(bf16)                # (D_out, H)
        asrc = asrc_ref[li].astype(bf16)                # (H, D_out)
        b = b_ref[li].astype(f32)                       # (1, D_out)

        hb = h.astype(bf16)
        z = jnp.dot(hb, w, preferred_element_type=f32)  # (N, D_out)
        zb = z.astype(bf16)

        # Attention scores for all heads with two matmuls (no per-head M=1 matmuls).
        d = jnp.dot(zb, adst, preferred_element_type=f32)                   # (N, H)
        r = jax.lax.dot_general(asrc, zb, dn, preferred_element_type=f32)   # (H, N)

        out_sum = None
        for hh in range(n_heads):
            e = d[:, hh:hh + 1] + r[hh:hh + 1, :]       # (N, N)
            e = jnp.where(e > 0, e, neg_slope * e)      # LeakyReLU
            e = e + mask_bias                           # mask non-edges
            m = jnp.max(e, axis=-1, keepdims=True)
            p = jnp.exp(e - m)
            inv = pl.reciprocal(jnp.sum(p, axis=-1, keepdims=True), approx=True)
            alpha = p * inv                             # softmax over neighbours
            zh_masked = z * head_masks[hh]              # lane-dense full-width head slice
            contrib = jnp.dot(alpha.astype(bf16), zh_masked.astype(bf16),
                              preferred_element_type=f32)   # (N, D_out)
            out_sum = contrib if out_sum is None else out_sum + contrib

        h_new = out_sum + b                             # single lane-dense (N, D_out) value
        if li < n_layers - 1:
            # ELU; exp(min(x,0)) avoids overflow on the untaken branch
            h_new = jnp.where(h_new > 0, h_new,
                              jnp.exp(jnp.minimum(h_new, 0.0)) - 1.0)
        h = h_new

    # Cosine similarity + convert_to_probability, emitted as a lane-dense (1, N) row.
    sent = sent_ref[0].astype(f32)                                          # (1, D)
    dot_row = jax.lax.dot_general(sent, h, dn, preferred_element_type=f32)  # (1, N)
    ones_row = jnp.ones((1, d_out), f32)
    hsq_row = jax.lax.dot_general(ones_row, h * h, dn,
                                  preferred_element_type=f32)               # (1, N)
    s_sq = jnp.sum(sent * sent, axis=-1, keepdims=True)                     # (1, 1)
    denom = jnp.maximum(jnp.sqrt(hsq_row) * jnp.sqrt(s_sq), eps)
    cos = dot_row * pl.reciprocal(denom, approx=True)
    cos = jnp.clip(cos, -1.0, 1.0)   # guard fp drift from bf16 matmuls / approx reciprocal
    o_ref[0] = ((cos + 1.0) * 0.5).astype(o_ref.dtype)                      # (1, N)


def gat_stack_cosine(gnn_input, adj_i8, sent_proj, w_stack, adst_stack, asrc_stack,
                     b_stack, *, n_heads):
    B, N, D = gnn_input.shape
    L = w_stack.shape[0]
    head_dim = D // n_heads
    sent3 = sent_proj.reshape(B, 1, D)
    kernel = functools.partial(_gat_stack_cosine_kernel, n_layers=L,
                               n_heads=n_heads, head_dim=head_dim)
    out = pl.pallas_call(
        kernel,
        out_shape=jax.ShapeDtypeStruct((B, 1, N), jnp.float32),
        grid=(B,),
        in_specs=[
            pl.BlockSpec((1, N, D), lambda g: (g, 0, 0)),        # node features
            pl.BlockSpec((1, N, N), lambda g: (g, 0, 0)),        # adjacency (int8)
            pl.BlockSpec((1, 1, D), lambda g: (g, 0, 0)),        # projected sentence vec
            pl.BlockSpec((L, D, D), lambda g: (0, 0, 0)),        # layer weights
            pl.BlockSpec((L, D, n_heads), lambda g: (0, 0, 0)),  # dst-score projections
            pl.BlockSpec((L, n_heads, D), lambda g: (0, 0, 0)),  # src-score projections
            pl.BlockSpec((L, 1, D), lambda g: (0, 0, 0)),        # layer biases
        ],
        out_specs=pl.BlockSpec((1, 1, N), lambda g: (g, 0, 0)),
        compiler_params=pltpu.CompilerParams(dimension_semantics=("parallel",)),
    )(gnn_input, adj_i8, sent3, w_stack, adst_stack, asrc_stack, b_stack)
    return out[:, 0, :]                                          # (B, N)


# ----------------------------------------------------------------------------
# Glue
# ----------------------------------------------------------------------------
def edges_to_dense_adj(edge_index, B, N):
    """edge_index: (2, E) global node ids in [0, B*N); edges stay within a graph.
    Returns int8 adj (B, N, N) with adj[b, dst, src] = 1, plus self loops."""
    src, dst = edge_index[0], edge_index[1]
    adj_flat = jnp.zeros((B * N, N), dtype=jnp.int8)
    adj_flat = adj_flat.at[dst, src % N].set(1)
    adj = adj_flat.reshape(B, N, N)
    adj = jnp.maximum(adj, jnp.eye(N, dtype=jnp.int8)[None])
    return adj


def _dst_score_matrix(a_dst, d_out):
    """(H, hd) -> (d_out, H) block layout so (z @ M)[:, h] = z_head_h . a_dst[h]."""
    n_heads, head_dim = a_dst.shape
    m = jnp.zeros((d_out, n_heads), jnp.float32)
    for h in range(n_heads):
        m = m.at[h * head_dim:(h + 1) * head_dim, h].set(a_dst[h])
    return m


def _src_score_matrix(a_src, d_out):
    """(H, hd) -> (H, d_out) block layout so (M @ z^T)[h, :] = a_src[h] . z_head_h."""
    n_heads, head_dim = a_src.shape
    m = jnp.zeros((n_heads, d_out), jnp.float32)
    for h in range(n_heads):
        m = m.at[h, h * head_dim:(h + 1) * head_dim].set(a_src[h])
    return m


def init_params(key, *, vocab, sent_dim, n_concept, concept_in_dim, concept_dim,
                n_layers, n_heads, std=0.02):
    head_dim = concept_dim // n_heads
    assert head_dim * n_heads == concept_dim
    keys = iter(jax.random.split(key, 5 + 3 * n_layers))
    p = {
        "tok_emb": std * jax.random.normal(next(keys), (vocab, sent_dim), jnp.float32),
        "concept_emb": std * jax.random.normal(next(keys), (n_concept + 2, concept_in_dim), jnp.float32),
        "cpt_w": std * jax.random.normal(next(keys), (concept_in_dim, concept_dim), jnp.float32),
        "cpt_b": jnp.zeros((1, concept_dim), jnp.float32),
        "sent_w": std * jax.random.normal(next(keys), (sent_dim, concept_dim), jnp.float32),
        "sent_b": jnp.zeros((1, concept_dim), jnp.float32),
        "gat": [],
    }
    for _ in range(n_layers):
        p["gat"].append({
            "w": std * jax.random.normal(next(keys), (concept_dim, concept_dim), jnp.float32),
            "a_src": std * jax.random.normal(next(keys), (n_heads, head_dim), jnp.float32),
            "a_dst": std * jax.random.normal(next(keys), (n_heads, head_dim), jnp.float32),
            "b": jnp.zeros((1, concept_dim), jnp.float32),
        })
    return p


def two_tower_forward(params, input_ids, attention_mask, token_type_ids,
                      concept_ids, node_type_ids, node_scores, adj_lengths,
                      edge_index_ids, edge_type_ids, *, n_heads):
    B, N = concept_ids.shape
    D = params["cpt_w"].shape[1]

    # --- text encoder ---
    # TODO(synk): RoBERTa / sentence-transformers encoder has no compact Pallas equivalent;
    # stubbed with a deterministic token-embedding + masked mean-pool producing sent_vecs (B, S).
    tok = jnp.take(params["tok_emb"], input_ids, axis=0)                  # (B, T, S)
    mask = attention_mask[..., None].astype(jnp.float32)
    sent_vecs = (tok * mask).sum(axis=1) / jnp.maximum(mask.sum(axis=1), 1.0)

    # --- sent_projection + GELU (Pallas) ---
    sent_proj = linear_act(sent_vecs, params["sent_w"], params["sent_b"], apply_gelu=True)  # (B, D)

    # --- concept embedding (gather) -> linear + GELU (Pallas); dropout_e identity in eval ---
    emb = jnp.take(params["concept_emb"], concept_ids.reshape(-1), axis=0)  # (B*N, Din)
    gnn_input = linear_act(emb, params["cpt_w"], params["cpt_b"], apply_gelu=True)
    gnn_input = gnn_input.reshape(B, N, D)                                  # (B, N, D)

    # --- edge list -> dense per-graph int8 adjacency ---
    adj = edges_to_dense_adj(edge_index_ids, B, N)
    # TODO(synk): edge_type_ids unused — plain (non-relational) GAT attention; node_type_ids,
    # node_scores, adj_lengths are unused by TwoTowerGNN.forward, matching the reference.

    # --- stacked per-layer GAT params (attention vectors packed into score projections) ---
    w_stack = jnp.stack([l["w"] for l in params["gat"]])                    # (L, D, D)
    adst_stack = jnp.stack([_dst_score_matrix(l["a_dst"], D) for l in params["gat"]])
    asrc_stack = jnp.stack([_src_score_matrix(l["a_src"], D) for l in params["gat"]])
    b_stack = jnp.stack([l["b"] for l in params["gat"]])                    # (L, 1, D)

    # --- fused GAT stack + cosine + probability (single Pallas call, grid over graphs) ---
    logits = gat_stack_cosine(gnn_input, adj, sent_proj, w_stack, adst_stack,
                              asrc_stack, b_stack, n_heads=n_heads)         # (B, N)
    return logits


# ----------------------------------------------------------------------------
if __name__ == "__main__":
    B, T, N = 2, 8, 16
    VOCAB, SENT_DIM = 64, 64
    N_CONCEPT, CONCEPT_IN_DIM, CONCEPT_DIM = 100, 48, 32
    N_LAYERS, N_HEADS = 2, 2
    E_PER = 24

    root = jax.random.PRNGKey(0)
    k_par, k_in = jax.random.split(root)
    params = init_params(k_par, vocab=VOCAB, sent_dim=SENT_DIM, n_concept=N_CONCEPT,
                         concept_in_dim=CONCEPT_IN_DIM, concept_dim=CONCEPT_DIM,
                         n_layers=N_LAYERS, n_heads=N_HEADS)

    ks = jax.random.split(k_in, 6)
    input_ids = jax.random.randint(ks[0], (B, T), 0, VOCAB, dtype=jnp.int32)
    attention_mask = jnp.ones((B, T), jnp.int32).at[:, T - 2:].set(0)
    token_type_ids = jnp.zeros((B, T), jnp.int32)
    concept_ids = jax.random.randint(ks[1], (B, N), 0, N_CONCEPT, dtype=jnp.int32)
    node_type_ids = jax.random.randint(ks[2], (B, N), 0, 4, dtype=jnp.int32)
    node_scores = jax.random.normal(ks[3], (B, N, 1), jnp.float32)
    adj_lengths = jnp.full((B,), N, jnp.int32)

    src_local = jax.random.randint(ks[4], (B, E_PER), 0, N, dtype=jnp.int32)
    dst_local = jax.random.randint(ks[5], (B, E_PER), 0, N, dtype=jnp.int32)
    offs = (jnp.arange(B, dtype=jnp.int32) * N)[:, None]
    edge_index_ids = jnp.stack([(src_local + offs).reshape(-1),
                                (dst_local + offs).reshape(-1)], axis=0)      # (2, B*E_PER)
    edge_type_ids = jnp.zeros((B * E_PER,), jnp.int32)

    fwd = jax.jit(functools.partial(two_tower_forward, n_heads=N_HEADS))
    logits = fwd(params, input_ids, attention_mask, token_type_ids,
                 concept_ids, node_type_ids, node_scores, adj_lengths,
                 edge_index_ids, edge_type_ids)
    logits = jax.block_until_ready(logits)

    assert logits.shape == (B, N), logits.shape
    assert bool(jnp.all(jnp.isfinite(logits)))
    assert bool(jnp.all((logits >= 0.0) & (logits <= 1.0)))   # (cos+1)/2 in [0, 1]
    print("KERNEL_OK")
</pallas_src>

<mosaic_0001>
module attributes {stable_mosaic.version = 11 : i64} {
  func.func @_linear_act_kernel(%arg0: i32, %arg1: memref<2x64xf32, #tpu.memory_space<vmem>>, %arg2: memref<64x32xf32, #tpu.memory_space<vmem>>, %arg3: memref<1x32xf32, #tpu.memory_space<vmem>>, %arg4: memref<2x32xf32, #tpu.memory_space<vmem>>) attributes {dimension_semantics = [#tpu.dimension_semantics<parallel>], iteration_bounds = array<i64: 1>, scalar_prefetch = 0 : i64, scratch_operands = 0 : i64, tpu.core_type = #tpu.core_type<tc>, window_params = [{transform_indices = @transform_0, window_bounds = array<i64: 2, 64>}, {pipeline_mode = #tpu.pipeline_mode<synchronous>, transform_indices = @transform_1, window_bounds = array<i64: 64, 32>}, {pipeline_mode = #tpu.pipeline_mode<synchronous>, transform_indices = @transform_2, window_bounds = array<i64: 1, 32>}, {transform_indices = @transform_3, window_bounds = array<i64: 2, 32>}]} {
    %c0 = arith.constant 0 : index
    %c0_0 = arith.constant 0 : index
    %0 = vector.load %arg1[%c0, %c0_0] : memref<2x64xf32, #tpu.memory_space<vmem>>, vector<2x64xf32>
    %1 = arith.truncf %0 : vector<2x64xf32> to vector<2x64xbf16>
    %c0_1 = arith.constant 0 : index
    %c0_2 = arith.constant 0 : index
    %2 = vector.load %arg2[%c0_1, %c0_2] : memref<64x32xf32, #tpu.memory_space<vmem>>, vector<64x32xf32>
    %3 = arith.truncf %2 : vector<64x32xf32> to vector<64x32xbf16>
    %c0_3 = arith.constant 0 : index
    %c0_4 = arith.constant 0 : index
    %4 = vector.load %arg3[%c0_3, %c0_4] : memref<1x32xf32, #tpu.memory_space<vmem>>, vector<1x32xf32>
    %cst = arith.constant dense<0.000000e+00> : vector<2x32xf32>
    %5 = tpu.matmul %1, %3, %cst {dimension_numbers = #tpu.dot_dimension_numbers<[1], [0], [0], [1], [0, 0, 1, 1], [], []>} : vector<2x64xbf16>, vector<64x32xbf16>, vector<2x32xf32> -> vector<2x32xf32>
    %6 = vector.broadcast %4 : vector<1x32xf32> to vector<2x32xf32>
    %7 = arith.addf %5, %6 : vector<2x32xf32>
    %cst_5 = arith.constant 5.000000e-01 : f32
    %8 = vector.broadcast %cst_5 : f32 to vector<2x32xf32>
    %9 = arith.mulf %8, %7 : vector<2x32xf32>
    %cst_6 = arith.constant 4.471500e-02 : f32
    %10 = vector.broadcast %cst_6 : f32 to vector<2x32xf32>
    %11 = arith.mulf %10, %7 : vector<2x32xf32>
    %12 = arith.mulf %11, %7 : vector<2x32xf32>
    %13 = arith.mulf %12, %7 : vector<2x32xf32>
    %14 = arith.addf %7, %13 : vector<2x32xf32>
    %cst_7 = arith.constant 0.797884583 : f32
    %15 = vector.broadcast %cst_7 : f32 to vector<2x32xf32>
    %16 = arith.mulf %15, %14 : vector<2x32xf32>
    %17 = math.tanh %16 : vector<2x32xf32>
    %cst_8 = arith.constant 1.000000e+00 : f32
    %18 = vector.broadcast %cst_8 : f32 to vector<2x32xf32>
    %19 = arith.addf %18, %17 : vector<2x32xf32>
    %20 = arith.mulf %9, %19 : vector<2x32xf32>
    %c0_9 = arith.constant 0 : index
    %c0_10 = arith.constant 0 : index
    %21 = vector.load %arg4[%c0_9, %c0_10] : memref<2x32xf32, #tpu.memory_space<vmem>>, vector<2x32xf32>
    tpu.vector_store %arg4[%c0_9, %c0_10], %20 {strides = array<i32>} : memref<2x32xf32, #tpu.memory_space<vmem>>, vector<2x32xf32>,
    return
  }
  func.func @transform_0(%arg0: i32) -> (i32, i32) {
    %c0_i32 = arith.constant 0 : i32
    %c0_i32_0 = arith.constant 0 : i32
    return %arg0, %c0_i32 : i32, i32
  }
  func.func @transform_1(%arg0: i32) -> (i32, i32) {
    %c0_i32 = arith.constant 0 : i32
    %c0_i32_0 = arith.constant 0 : i32
    %c0_i32_1 = arith.constant 0 : i32
    return %c0_i32, %c0_i32_0 : i32, i32
  }
  func.func @transform_2(%arg0: i32) -> (i32, i32) {
    %c0_i32 = arith.constant 0 : i32
    %c0_i32_0 = arith.constant 0 : i32
    %c0_i32_1 = arith.constant 0 : i32
    return %c0_i32, %c0_i32_0 : i32, i32
  }
  func.func @transform_3(%arg0: i32) -> (i32, i32) {
    %c0_i32 = arith.constant 0 : i32
    %c0_i32_0 = arith.constant 0 : i32
    return %arg0, %c0_i32 : i32, i32
  }
}

module attributes {stable_mosaic.version = 11 : i64} {
  func.func @_linear_act_kernel(%arg0: i32, %arg1: memref<32x48xf32, #tpu.memory_space<vmem>>, %arg2: memref<48x32xf32, #tpu.memory_space<vmem>>, %arg3: memref<1x32xf32, #tpu.memory_space<vmem>>, %arg4: memref<32x32xf32, #tpu.memory_space<vmem>>) attributes {dimension_semantics = [#tpu.dimension_semantics<parallel>], iteration_bounds = array<i64: 1>, scalar_prefetch = 0 : i64, scratch_operands = 0 : i64, tpu.core_type = #tpu.core_type<tc>, window_params = [{transform_indices = @transform_0, window_bounds = array<i64: 32, 48>}, {pipeline_mode = #tpu.pipeline_mode<synchronous>, transform_indices = @transform_1, window_bounds = array<i64: 48, 32>}, {pipeline_mode = #tpu.pipeline_mode<synchronous>, transform_indices = @transform_2, window_bounds = array<i64: 1, 32>}, {transform_indices = @transform_3, window_bounds = array<i64: 32, 32>}]} {
    %c0 = arith.constant 0 : index
    %c0_0 = arith.constant 0 : index
    %0 = vector.load %arg1[%c0, %c0_0] : memref<32x48xf32, #tpu.memory_space<vmem>>, vector<32x48xf32>
    %1 = arith.truncf %0 : vector<32x48xf32> to vector<32x48xbf16>
    %c0_1 = arith.constant 0 : index
    %c0_2 = arith.constant 0 : index
    %2 = vector.load %arg2[%c0_1, %c0_2] : memref<48x32xf32, #tpu.memory_space<vmem>>, vector<48x32xf32>
    %3 = arith.truncf %2 : vector<48x32xf32> to vector<48x32xbf16>
    %c0_3 = arith.constant 0 : index
    %c0_4 = arith.constant 0 : index
    %4 = vector.load %arg3[%c0_3, %c0_4] : memref<1x32xf32, #tpu.memory_space<vmem>>, vector<1x32xf32>
    %cst = arith.constant dense<0.000000e+00> : vector<32x32xf32>
    %5 = tpu.matmul %1, %3, %cst {dimension_numbers = #tpu.dot_dimension_numbers<[1], [0], [0], [1], [0, 0, 1, 1], [], []>} : vector<32x48xbf16>, vector<48x32xbf16>, vector<32x32xf32> -> vector<32x32xf32>
    %6 = vector.broadcast %4 : vector<1x32xf32> to vector<32x32xf32>
    %7 = arith.addf %5, %6 : vector<32x32xf32>
    %cst_5 = arith.constant 5.000000e-01 : f32
    %8 = vector.broadcast %cst_5 : f32 to vector<32x32xf32>
    %9 = arith.mulf %8, %7 : vector<32x32xf32>
    %cst_6 = arith.constant 4.471500e-02 : f32
    %10 = vector.broadcast %cst_6 : f32 to vector<32x32xf32>
    %11 = arith.mulf %10, %7 : vector<32x32xf32>
    %12 = arith.mulf %11, %7 : vector<32x32xf32>
    %13 = arith.mulf %12, %7 : vector<32x32xf32>
    %14 = arith.addf %7, %13 : vector<32x32xf32>
    %cst_7 = arith.constant 0.797884583 : f32
    %15 = vector.broadcast %cst_7 : f32 to vector<32x32xf32>
    %16 = arith.mulf %15, %14 : vector<32x32xf32>
    %17 = math.tanh %16 : vector<32x32xf32>
    %cst_8 = arith.constant 1.000000e+00 : f32
    %18 = vector.broadcast %cst_8 : f32 to vector<32x32xf32>
    %19 = arith.addf %18, %17 : vector<32x32xf32>
    %20 = arith.mulf %9, %19 : vector<32x32xf32>
    %c0_9 = arith.constant 0 : index
    %c0_10 = arith.constant 0 : index
    %21 = vector.load %arg4[%c0_9, %c0_10] : memref<32x32xf32, #tpu.memory_space<vmem>>, vector<32x32xf32>
    tpu.vector_store %arg4[%c0_9, %c0_10], %20 {strides = array<i32>} : memref<32x32xf32, #tpu.memory_space<vmem>>, vector<32x32xf32>,
    return
  }
  func.func @transform_0(%arg0: i32) -> (i32, i32) {
    %c0_i32 = arith.constant 0 : i32
    %c0_i32_0 = arith.constant 0 : i32
    return %arg0, %c0_i32 : i32, i32
  }
  func.func @transform_1(%arg0: i32) -> (i32, i32) {
    %c0_i32 = arith.constant 0 : i32
    %c0_i32_0 = arith.constant 0 : i32
    %c0_i32_1 = arith.constant 0 : i32
    return %c0_i32, %c0_i32_0 : i32, i32
  }
  func.func @transform_2(%arg0: i32) -> (i32, i32) {
    %c0_i32 = arith.constant 0 : i32
    %c0_i32_0 = arith.constant 0 : i32
    %c0_i32_1 = arith.constant 0 : i32
    return %c0_i32, %c0_i32_0 : i32, i32
  }
  func.func @transform_3(%arg0: i32) -> (i32, i32) {
    %c0_i32 = arith.constant 0 : i32
    %c0_i32_0 = arith.constant 0 : i32
    return %arg0, %c0_i32 : i32, i32
  }
}

module attributes {stable_mosaic.version = 11 : i64} {
  func.func @_gat_stack_cosine_kernel(%arg0: i32, %arg1: memref<1x16x32xf32, #tpu.memory_space<vmem>>, %arg2: memref<1x16x16xi8, #tpu.memory_space<vmem>>, %arg3: memref<1x1x32xf32, #tpu.memory_space<vmem>>, %arg4: memref<2x32x32xf32, #tpu.memory_space<vmem>>, %arg5: memref<2x32x2xf32, #tpu.memory_space<vmem>>, %arg6: memref<2x2x32xf32, #tpu.memory_space<vmem>>, %arg7: memref<2x1x32xf32, #tpu.memory_space<vmem>>, %arg8: memref<1x1x16xf32, #tpu.memory_space<vmem>>) attributes {dimension_semantics = [#tpu.dimension_semantics<parallel>], iteration_bounds = array<i64: 2>, scalar_prefetch = 0 : i64, scratch_operands = 0 : i64, tpu.core_type = #tpu.core_type<tc>, window_params = [{transform_indices = @transform_0, window_bounds = array<i64: 1, 16, 32>}, {transform_indices = @transform_1, window_bounds = array<i64: 1, 16, 16>}, {transform_indices = @transform_2, window_bounds = array<i64: 1, 1, 32>}, {pipeline_mode = #tpu.pipeline_mode<synchronous>, transform_indices = @transform_3, window_bounds = array<i64: 2, 32, 32>}, {pipeline_mode = #tpu.pipeline_mode<synchronous>, transform_indices = @transform_4, window_bounds = array<i64: 2, 32, 2>}, {pipeline_mode = #tpu.pipeline_mode<synchronous>, transform_indices = @transform_5, window_bounds = array<i64: 2, 2, 32>}, {pipeline_mode = #tpu.pipeline_mode<synchronous>, transform_indices = @transform_6, window_bounds = array<i64: 2, 1, 32>}, {transform_indices = @transform_7, window_bounds = array<i64: 1, 1, 16>}]} {
    %c0 = arith.constant 0 : index
    %c0_0 = arith.constant 0 : index
    %c0_1 = arith.constant 0 : index
    %0 = vector.load %arg1[%c0, %c0_0, %c0_1] : memref<1x16x32xf32, #tpu.memory_space<vmem>>, vector<1x16x32xf32>
    %1 = vector.shape_cast %0 : vector<1x16x32xf32> to vector<16x32xf32>
    %c0_2 = arith.constant 0 : index
    %c0_3 = arith.constant 0 : index
    %c0_4 = arith.constant 0 : index
    %2 = vector.load %arg2[%c0_2, %c0_3, %c0_4] : memref<1x16x16xi8, #tpu.memory_space<vmem>>, vector<1x16x16xi8>
    %3 = vector.shape_cast %2 : vector<1x16x16xi8> to vector<16x16xi8>
    %4 = arith.sitofp %3 : vector<16x16xi8> to vector<16x16xf32>
    %cst = arith.constant 0.000000e+00 : f32
    %5 = vector.broadcast %cst : f32 to vector<16x16xf32>
    %6 = arith.cmpf ogt, %4, %5 : vector<16x16xf32>
    %cst_5 = arith.constant 0.000000e+00 : f32
    %cst_6 = arith.constant -1.000000e+30 : f32
    %7 = vector.broadcast %cst_5 : f32 to vector<16x16xf32>
    %8 = vector.broadcast %cst_6 : f32 to vector<16x16xf32>
    %9 = arith.select %6, %7, %8 : vector<16x16xi1>, vector<16x16xf32>
    %10 = tpu.iota {dimensions = array<i32: 1>} : vector<1x32xi32>
    %c0_i32 = arith.constant 0 : i32
    %11 = vector.broadcast %c0_i32 : i32 to vector<1x32xi32>
    %12 = arith.cmpi sge, %10, %11 : vector<1x32xi32>
    %c16_i32 = arith.constant 16 : i32
    %13 = vector.broadcast %c16_i32 : i32 to vector<1x32xi32>
    %14 = arith.cmpi slt, %10, %13 : vector<1x32xi32>
    %15 = arith.andi %12, %14 : vector<1x32xi1>
    %16 = arith.extui %15 : vector<1x32xi1> to vector<1x32xi32>
    %17 = arith.sitofp %16 : vector<1x32xi32> to vector<1x32xf32>
    %c16_i32_7 = arith.constant 16 : i32
    %18 = vector.broadcast %c16_i32_7 : i32 to vector<1x32xi32>
    %19 = arith.cmpi sge, %10, %18 : vector<1x32xi32>
    %c32_i32 = arith.constant 32 : i32
    %20 = vector.broadcast %c32_i32 : i32 to vector<1x32xi32>
    %21 = arith.cmpi slt, %10, %20 : vector<1x32xi32>
    %22 = arith.andi %19, %21 : vector<1x32xi1>
    %23 = arith.extui %22 : vector<1x32xi1> to vector<1x32xi32>
    %24 = arith.sitofp %23 : vector<1x32xi32> to vector<1x32xf32>
    %c0_8 = arith.constant 0 : index
    %c0_9 = arith.constant 0 : index
    %c0_10 = arith.constant 0 : index
    %25 = vector.load %arg4[%c0_8, %c0_9, %c0_10] : memref<2x32x32xf32, #tpu.memory_space<vmem>>, vector<1x32x32xf32>
    %26 = vector.shape_cast %25 : vector<1x32x32xf32> to vector<32x32xf32>
    %27 = arith.truncf %26 : vector<32x32xf32> to vector<32x32xbf16>
    %c0_11 = arith.constant 0 : index
    %c0_12 = arith.constant 0 : index
    %c0_13 = arith.constant 0 : index
    %28 = vector.load %arg5[%c0_11, %c0_12, %c0_13] : memref<2x32x2xf32, #tpu.memory_space<vmem>>, vector<1x32x2xf32>
    %29 = vector.shape_cast %28 : vector<1x32x2xf32> to vector<32x2xf32>
    %30 = arith.truncf %29 : vector<32x2xf32> to vector<32x2xbf16>
    %c0_14 = arith.constant 0 : index
    %c0_15 = arith.constant 0 : index
    %c0_16 = arith.constant 0 : index
    %31 = vector.load %arg6[%c0_14, %c0_15, %c0_16] : memref<2x2x32xf32, #tpu.memory_space<vmem>>, vector<1x2x32xf32>
    %32 = vector.shape_cast %31 : vector<1x2x32xf32> to vector<2x32xf32>
    %33 = arith.truncf %32 : vector<2x32xf32> to vector<2x32xbf16>
    %c0_17 = arith.constant 0 : index
    %c0_18 = arith.constant 0 : index
    %c0_19 = arith.constant 0 : index
    %34 = vector.load %arg7[%c0_17, %c0_18, %c0_19] : memref<2x1x32xf32, #tpu.memory_space<vmem>>, vector<1x1x32xf32>
    %35 = vector.shape_cast %34 : vector<1x1x32xf32> to vector<1x32xf32>
    %36 = arith.truncf %1 : vector<16x32xf32> to vector<16x32xbf16>
    %cst_20 = arith.constant dense<0.000000e+00> : vector<16x32xf32>
    %37 = tpu.matmul %36, %27, %cst_20 {dimension_numbers = #tpu.dot_dimension_numbers<[1], [0], [0], [1], [0, 0, 1, 1], [], []>} : vector<16x32xbf16>, vector<32x32xbf16>, vector<16x32xf32> -> vector<16x32xf32>
    %38 = arith.truncf %37 : vector<16x32xf32> to vector<16x32xbf16>
    %cst_21 = arith.constant dense<0.000000e+00> : vector<16x2xf32>
    %39 = tpu.matmul %38, %30, %cst_21 {dimension_numbers = #tpu.dot_dimension_numbers<[1], [0], [0], [1], [0, 0, 1, 1], [], []>} : vector<16x32xbf16>, vector<32x2xbf16>, vector<16x2xf32> -> vector<16x2xf32>
    %cst_22 = arith.constant dense<0.000000e+00> : vector<2x16xf32>
    %40 = tpu.matmul %33, %38, %cst_22 {dimension_numbers = #tpu.dot_dimension_numbers<[1], [1], [0], [0], [0, 0, 1, 0], [], []>} : vector<2x32xbf16>, vector<16x32xbf16>, vector<2x16xf32> -> vector<2x16xf32>
    %41 = vector.extract_strided_slice %39 {offsets = [0, 0], sizes = [16, 1], strides = [1, 1]} : vector<16x2xf32> to vector<16x1xf32>
    %42 = vector.extract_strided_slice %40 {offsets = [0, 0], sizes = [1, 16], strides = [1, 1]} : vector<2x16xf32> to vector<1x16xf32>
    %43 = vector.broadcast %41 : vector<16x1xf32> to vector<16x16xf32>
    %44 = vector.broadcast %42 : vector<1x16xf32> to vector<16x16xf32>
    %45 = arith.addf %43, %44 : vector<16x16xf32>
    %cst_23 = arith.constant 0.000000e+00 : f32
    %46 = vector.broadcast %cst_23 : f32 to vector<16x16xf32>
    %47 = arith.cmpf ogt, %45, %46 : vector<16x16xf32>
    %cst_24 = arith.constant 2.000000e-01 : f32
    %48 = vector.broadcast %cst_24 : f32 to vector<16x16xf32>
    %49 = arith.mulf %48, %45 : vector<16x16xf32>
    %50 = arith.select %47, %45, %49 : vector<16x16xi1>, vector<16x16xf32>
    %51 = arith.addf %50, %9 : vector<16x16xf32>
    %cst_25 = arith.constant dense<0xFF800000> : vector<16xf32>
    %52 = vector.multi_reduction <maximumf>, %51, %cst_25 [1] : vector<16x16xf32> to vector<16xf32>
    %53 = vector.shape_cast %52 : vector<16xf32> to vector<16x1xf32>
    %54 = vector.broadcast %53 : vector<16x1xf32> to vector<16x16xf32>
    %55 = arith.subf %51, %54 : vector<16x16xf32>
    %56 = math.exp %55 : vector<16x16xf32>
    %cst_26 = arith.constant dense<0.000000e+00> : vector<16xf32>
    %57 = vector.multi_reduction <add>, %56, %cst_26 [1] : vector<16x16xf32> to vector<16xf32>
    %58 = vector.shape_cast %57 : vector<16xf32> to vector<16x1xf32>
    %59 = tpu.reciprocal %58 {approx = true} : vector<16x1xf32> -> vector<16x1xf32>
    %60 = vector.broadcast %59 : vector<16x1xf32> to vector<16x16xf32>
    %61 = arith.mulf %56, %60 : vector<16x16xf32>
    %62 = vector.broadcast %17 : vector<1x32xf32> to vector<16x32xf32>
    %63 = arith.mulf %37, %62 : vector<16x32xf32>
    %64 = arith.truncf %61 : vector<16x16xf32> to vector<16x16xbf16>
    %65 = arith.truncf %63 : vector<16x32xf32> to vector<16x32xbf16>
    %cst_27 = arith.constant dense<0.000000e+00> : vector<16x32xf32>
    %66 = tpu.matmul %64, %65, %cst_27 {dimension_numbers = #tpu.dot_dimension_numbers<[1], [0], [0], [1], [0, 0, 1, 1], [], []>} : vector<16x16xbf16>, vector<16x32xbf16>, vector<16x32xf32> -> vector<16x32xf32>
    %67 = vector.extract_strided_slice %39 {offsets = [0, 1], sizes = [16, 1], strides = [1, 1]} : vector<16x2xf32> to vector<16x1xf32>
    %68 = vector.extract_strided_slice %40 {offsets = [1, 0], sizes = [1, 16], strides = [1, 1]} : vector<2x16xf32> to vector<1x16xf32>
    %69 = vector.broadcast %67 : vector<16x1xf32> to vector<16x16xf32>
    %70 = vector.broadcast %68 : vector<1x16xf32> to vector<16x16xf32>
    %71 = arith.addf %69, %70 : vector<16x16xf32>
    %cst_28 = arith.constant 0.000000e+00 : f32
    %72 = vector.broadcast %cst_28 : f32 to vector<16x16xf32>
    %73 = arith.cmpf ogt, %71, %72 : vector<16x16xf32>
    %cst_29 = arith.constant 2.000000e-01 : f32
    %74 = vector.broadcast %cst_29 : f32 to vector<16x16xf32>
    %75 = arith.mulf %74, %71 : vector<16x16xf32>
    %76 = arith.select %73, %71, %75 : vector<16x16xi1>, vector<16x16xf32>
    %77 = arith.addf %76, %9 : vector<16x16xf32>
    %cst_30 = arith.constant dense<0xFF800000> : vector<16xf32>
    %78 = vector.multi_reduction <maximumf>, %77, %cst_30 [1] : vector<16x16xf32> to vector<16xf32>
    %79 = vector.shape_cast %78 : vector<16xf32> to vector<16x1xf32>
    %80 = vector.broadcast %79 : vector<16x1xf32> to vector<16x16xf32>
    %81 = arith.subf %77, %80 : vector<16x16xf32>
    %82 = math.exp %81 : vector<16x16xf32>
    %cst_31 = arith.constant dense<0.000000e+00> : vector<16xf32>
    %83 = vector.multi_reduction <add>, %82, %cst_31 [1] : vector<16x16xf32> to vector<16xf32>
    %84 = vector.shape_cast %83 : vector<16xf32> to vector<16x1xf32>
    %85 = tpu.reciprocal %84 {approx = true} : vector<16x1xf32> -> vector<16x1xf32>
    %86 = vector.broadcast %85 : vector<16x1xf32> to vector<16x16xf32>
    %87 = arith.mulf %82, %86 : vector<16x16xf32>
    %88 = vector.broadcast %24 : vector<1x32xf32> to vector<16x32xf32>
    %89 = arith.mulf %37, %88 : vector<16x32xf32>
    %90 = arith.truncf %87 : vector<16x16xf32> to vector<16x16xbf16>
    %91 = arith.truncf %89 : vector<16x32xf32> to vector<16x32xbf16>
    %cst_32 = arith.constant dense<0.000000e+00> : vector<16x32xf32>
    %92 = tpu.matmul %90, %91, %cst_32 {dimension_numbers = #tpu.dot_dimension_numbers<[1], [0], [0], [1], [0, 0, 1, 1], [], []>} : vector<16x16xbf16>, vector<16x32xbf16>, vector<16x32xf32> -> vector<16x32xf32>
    %93 = arith.addf %66, %92 : vector<16x32xf32>
    %94 = vector.broadcast %35 : vector<1x32xf32> to vector<16x32xf32>
    %95 = arith.addf %93, %94 : vector<16x32xf32>
    %cst_33 = arith.constant 0.000000e+00 : f32
    %96 = vector.broadcast %cst_33 : f32 to vector<16x32xf32>
    %97 = arith.cmpf ogt, %95, %96 : vector<16x32xf32>
    %cst_34 = arith.constant 0.000000e+00 : f32
    %98 = vector.broadcast %cst_34 : f32 to vector<16x32xf32>
    %99 = arith.minimumf %95, %98 : vector<16x32xf32>
    %100 = math.exp %99 : vector<16x32xf32>
    %cst_35 = arith.constant 1.000000e+00 : f32
    %101 = vector.broadcast %cst_35 : f32 to vector<16x32xf32>
    %102 = arith.subf %100, %101 : vector<16x32xf32>
    %103 = arith.select %97, %95, %102 : vector<16x32xi1>, vector<16x32xf32>
    %c1 = arith.constant 1 : index
    %c0_36 = arith.constant 0 : index
    %c0_37 = arith.constant 0 : index
    %104 = vector.load %arg4[%c1, %c0_36, %c0_37] : memref<2x32x32xf32, #tpu.memory_space<vmem>>, vector<1x32x32xf32>
    %105 = vector.shape_cast %104 : vector<1x32x32xf32> to vector<32x32xf32>
    %106 = arith.truncf %105 : vector<32x32xf32> to vector<32x32xbf16>
    %c1_38 = arith.constant 1 : index
    %c0_39 = arith.constant 0 : index
    %c0_40 = arith.constant 0 : index
    %107 = vector.load %arg5[%c1_38, %c0_39, %c0_40] : memref<2x32x2xf32, #tpu.memory_space<vmem>>, vector<1x32x2xf32>
    %108 = vector.shape_cast %107 : vector<1x32x2xf32> to vector<32x2xf32>
    %109 = arith.truncf %108 : vector<32x2xf32> to vector<32x2xbf16>
    %c1_41 = arith.constant 1 : index
    %c0_42 = arith.constant 0 : index
    %c0_43 = arith.constant 0 : index
    %110 = vector.load %arg6[%c1_41, %c0_42, %c0_43] : memref<2x2x32xf32, #tpu.memory_space<vmem>>, vector<1x2x32xf32>
    %111 = vector.shape_cast %110 : vector<1x2x32xf32> to vector<2x32xf32>
    %112 = arith.truncf %111 : vector<2x32xf32> to vector<2x32xbf16>
    %c1_44 = arith.constant 1 : index
    %c0_45 = arith.constant 0 : index
    %c0_46 = arith.constant 0 : index
    %113 = vector.load %arg7[%c1_44, %c0_45, %c0_46] : memref<2x1x32xf32, #tpu.memory_space<vmem>>, vector<1x1x32xf32>
    %114 = vector.shape_cast %113 : vector<1x1x32xf32> to vector<1x32xf32>
    %115 = arith.truncf %103 : vector<16x32xf32> to vector<16x32xbf16>
    %cst_47 = arith.constant dense<0.000000e+00> : vector<16x32xf32>
    %116 = tpu.matmul %115, %106, %cst_47 {dimension_numbers = #tpu.dot_dimension_numbers<[1], [0], [0], [1], [0, 0, 1, 1], [], []>} : vector<16x32xbf16>, vector<32x32xbf16>, vector<16x32xf32> -> vector<16x32xf32>
    %117 = arith.truncf %116 : vector<16x32xf32> to vector<16x32xbf16>
    %cst_48 = arith.constant dense<0.000000e+00> : vector<16x2xf32>
    %118 = tpu.matmul %117, %109, %cst_48 {dimension_numbers = #tpu.dot_dimension_numbers<[1], [0], [0], [1], [0, 0, 1, 1], [], []>} : vector<16x32xbf16>, vector<32x2xbf16>, vector<16x2xf32> -> vector<16x2xf32>
    %cst_49 = arith.constant dense<0.000000e+00> : vector<2x16xf32>
    %119 = tpu.matmul %112, %117, %cst_49 {dimension_numbers = #tpu.dot_dimension_numbers<[1], [1], [0], [0], [0, 0, 1, 0], [], []>} : vector<2x32xbf16>, vector<16x32xbf16>, vector<2x16xf32> -> vector<2x16xf32>
    %120 = vector.extract_strided_slice %118 {offsets = [0, 0], sizes = [16, 1], strides = [1, 1]} : vector<16x2xf32> to vector<16x1xf32>
    %121 = vector.extract_strided_slice %119 {offsets = [0, 0], sizes = [1, 16], strides = [1, 1]} : vector<2x16xf32> to vector<1x16xf32>
    %122 = vector.broadcast %120 : vector<16x1xf32> to vector<16x16xf32>
    %123 = vector.broadcast %121 : vector<1x16xf32> to vector<16x16xf32>
    %124 = arith.addf %122, %123 : vector<16x16xf32>
    %cst_50 = arith.constant 0.000000e+00 : f32
    %125 = vector.broadcast %cst_50 : f32 to vector<16x16xf32>
    %126 = arith.cmpf ogt, %124, %125 : vector<16x16xf32>
    %cst_51 = arith.constant 2.000000e-01 : f32
    %127 = vector.broadcast %cst_51 : f32 to vector<16x16xf32>
    %128 = arith.mulf %127, %124 : vector<16x16xf32>
    %129 = arith.select %126, %124, %128 : vector<16x16xi1>, vector<16x16xf32>
    %130 = arith.addf %129, %9 : vector<16x16xf32>
    %cst_52 = arith.constant dense<0xFF800000> : vector<16xf32>
    %131 = vector.multi_reduction <maximumf>, %130, %cst_52 [1] : vector<16x16xf32> to vector<16xf32>
    %132 = vector.shape_cast %131 : vector<16xf32> to vector<16x1xf32>
    %133 = vector.broadcast %132 : vector<16x1xf32> to vector<16x16xf32>
    %134 = arith.subf %130, %133 : vector<16x16xf32>
    %135 = math.exp %134 : vector<16x16xf32>
    %cst_53 = arith.constant dense<0.000000e+00> : vector<16xf32>
    %136 = vector.multi_reduction <add>, %135, %cst_53 [1] : vector<16x16xf32> to vector<16xf32>
    %137 = vector.shape_cast %136 : vector<16xf32> to vector<16x1xf32>
    %138 = tpu.reciprocal %137 {approx = true} : vector<16x1xf32> -> vector<16x1xf32>
    %139 = vector.broadcast %138 : vector<16x1xf32> to vector<16x16xf32>
    %140 = arith.mulf %135, %139 : vector<16x16xf32>
    %141 = vector.broadcast %17 : vector<1x32xf32> to vector<16x32xf32>
    %142 = arith.mulf %116, %141 : vector<16x32xf32>
    %143 = arith.truncf %140 : vector<16x16xf32> to vector<16x16xbf16>
    %144 = arith.truncf %142 : vector<16x32xf32> to vector<16x32xbf16>
    %cst_54 = arith.constant dense<0.000000e+00> : vector<16x32xf32>
    %145 = tpu.matmul %143, %144, %cst_54 {dimension_numbers = #tpu.dot_dimension_numbers<[1], [0], [0], [1], [0, 0, 1, 1], [], []>} : vector<16x16xbf16>, vector<16x32xbf16>, vector<16x32xf32> -> vector<16x32xf32>
    %146 = vector.extract_strided_slice %118 {offsets = [0, 1], sizes = [16, 1], strides = [1, 1]} : vector<16x2xf32> to vector<16x1xf32>
    %147 = vector.extract_strided_slice %119 {offsets = [1, 0], sizes = [1, 16], strides = [1, 1]} : vector<2x16xf32> to vector<1x16xf32>
    %148 = vector.broadcast %146 : vector<16x1xf32> to vector<16x16xf32>
    %149 = vector.broadcast %147 : vector<1x16xf32> to vector<16x16xf32>
    %150 = arith.addf %148, %149 : vector<16x16xf32>
    %cst_55 = arith.constant 0.000000e+00 : f32
    %151 = vector.broadcast %cst_55 : f32 to vector<16x16xf32>
    %152 = arith.cmpf ogt, %150, %151 : vector<16x16xf32>
    %cst_56 = arith.constant 2.000000e-01 : f32
    %153 = vector.broadcast %cst_56 : f32 to vector<16x16xf32>
    %154 = arith.mulf %153, %150 : vector<16x16xf32>
    %155 = arith.select %152, %150, %154 : vector<16x16xi1>, vector<16x16xf32>
    %156 = arith.addf %155, %9 : vector<16x16xf32>
    %cst_57 = arith.constant dense<0xFF800000> : vector<16xf32>
    %157 = vector.multi_reduction <maximumf>, %156, %cst_57 [1] : vector<16x16xf32> to vector<16xf32>
    %158 = vector.shape_cast %157 : vector<16xf32> to vector<16x1xf32>
    %159 = vector.broadcast %158 : vector<16x1xf32> to vector<16x16xf32>
    %160 = arith.subf %156, %159 : vector<16x16xf32>
    %161 = math.exp %160 : vector<16x16xf32>
    %cst_58 = arith.constant dense<0.000000e+00> : vector<16xf32>
    %162 = vector.multi_reduction <add>, %161, %cst_58 [1] : vector<16x16xf32> to vector<16xf32>
    %163 = vector.shape_cast %162 : vector<16xf32> to vector<16x1xf32>
    %164 = tpu.reciprocal %163 {approx = true} : vector<16x1xf32> -> vector<16x1xf32>
    %165 = vector.broadcast %164 : vector<16x1xf32> to vector<16x16xf32>
    %166 = arith.mulf %161, %165 : vector<16x16xf32>
    %167 = vector.broadcast %24 : vector<1x32xf32> to vector<16x32xf32>
    %168 = arith.mulf %116, %167 : vector<16x32xf32>
    %169 = arith.truncf %166 : vector<16x16xf32> to vector<16x16xbf16>
    %170 = arith.truncf %168 : vector<16x32xf32> to vector<16x32xbf16>
    %cst_59 = arith.constant dense<0.000000e+00> : vector<16x32xf32>
    %171 = tpu.matmul %169, %170, %cst_59 {dimension_numbers = #tpu.dot_dimension_numbers<[1], [0], [0], [1], [0, 0, 1, 1], [], []>} : vector<16x16xbf16>, vector<16x32xbf16>, vector<16x32xf32> -> vector<16x32xf32>
    %172 = arith.addf %145, %171 : vector<16x32xf32>
    %173 = vector.broadcast %114 : vector<1x32xf32> to vector<16x32xf32>
    %174 = arith.addf %172, %173 : vector<16x32xf32>
    %c0_60 = arith.constant 0 : index
    %c0_61 = arith.constant 0 : index
    %c0_62 = arith.constant 0 : index
    %175 = vector.load %arg3[%c0_60, %c0_61, %c0_62] : memref<1x1x32xf32, #tpu.memory_space<vmem>>, vector<1x1x32xf32>
    %176 = vector.shape_cast %175 : vector<1x1x32xf32> to vector<1x32xf32>
    %cst_63 = arith.constant dense<0.000000e+00> : vector<1x16xf32>
    %177 = tpu.matmul %176, %174, %cst_63 {dimension_numbers = #tpu.dot_dimension_numbers<[1], [1], [0], [0], [0, 0, 1, 0], [], []>} : vector<1x32xf32>, vector<16x32xf32>, vector<1x16xf32> -> vector<1x16xf32>
    %cst_64 = arith.constant 1.000000e+00 : f32
    %178 = vector.broadcast %cst_64 : f32 to vector<1x32xf32>
    %179 = arith.mulf %174, %174 : vector<16x32xf32>
    %cst_65 = arith.constant dense<0.000000e+00> : vector<1x16xf32>
    %180 = tpu.matmul %178, %179, %cst_65 {dimension_numbers = #tpu.dot_dimension_numbers<[1], [1], [0], [0], [0, 0, 1, 0], [], []>} : vector<1x32xf32>, vector<16x32xf32>, vector<1x16xf32> -> vector<1x16xf32>
    %181 = arith.mulf %176, %176 : vector<1x32xf32>
    %cst_66 = arith.constant dense<0.000000e+00> : vector<1xf32>
    %182 = vector.multi_reduction <add>, %181, %cst_66 [1] : vector<1x32xf32> to vector<1xf32>
    %183 = vector.shape_cast %182 : vector<1xf32> to vector<1x1xf32>
    %184 = math.sqrt %180 : vector<1x16xf32>
    %185 = math.sqrt %183 : vector<1x1xf32>
    %186 = vector.broadcast %185 : vector<1x1xf32> to vector<1x16xf32>
    %187 = arith.mulf %184, %186 : vector<1x16xf32>
    %cst_67 = arith.constant 9.99999993E-9 : f32
    %188 = vector.broadcast %cst_67 : f32 to vector<1x16xf32>
    %189 = arith.maximumf %187, %188 : vector<1x16xf32>
    %190 = tpu.reciprocal %189 {approx = true} : vector<1x16xf32> -> vector<1x16xf32>
    %191 = arith.mulf %177, %190 : vector<1x16xf32>
    %cst_68 = arith.constant -1.000000e+00 : f32
    %cst_69 = arith.constant 1.000000e+00 : f32
    %192 = vector.broadcast %cst_68 : f32 to vector<1x16xf32>
    %193 = arith.maximumf %192, %191 : vector<1x16xf32>
    %194 = vector.broadcast %cst_69 : f32 to vector<1x16xf32>
    %195 = arith.minimumf %194, %193 : vector<1x16xf32>
    %cst_70 = arith.constant 1.000000e+00 : f32
    %196 = vector.broadcast %cst_70 : f32 to vector<1x16xf32>
    %197 = arith.addf %195, %196 : vector<1x16xf32>
    %cst_71 = arith.constant 5.000000e-01 : f32
    %198 = vector.broadcast %cst_71 : f32 to vector<1x16xf32>
    %199 = arith.mulf %197, %198 : vector<1x16xf32>
    %c0_72 = arith.constant 0 : index
    %c0_73 = arith.constant 0 : index
    %c0_74 = arith.constant 0 : index
    %200 = vector.load %arg8[%c0_72, %c0_73, %c0_74] : memref<1x1x16xf32, #tpu.memory_space<vmem>>, vector<1x1x16xf32>
    %201 = vector.shape_cast %200 : vector<1x1x16xf32> to vector<1x16xf32>
    %202 = vector.shape_cast %199 : vector<1x16xf32> to vector<1x1x16xf32>
    tpu.vector_store %arg8[%c0_72, %c0_73, %c0_74], %202 {strides = array<i32>} : memref<1x1x16xf32, #tpu.memory_space<vmem>>, vector<1x1x16xf32>,
    return
  }
  func.func @transform_0(%arg0: i32) -> (i32, i32, i32) {
    %c0_i32 = arith.constant 0 : i32
    %c0_i32_0 = arith.constant 0 : i32
    %c0_i32_1 = arith.constant 0 : i32
    return %arg0, %c0_i32, %c0_i32_0 : i32, i32, i32
  }
  func.func @transform_1(%arg0: i32) -> (i32, i32, i32) {
    %c0_i32 = arith.constant 0 : i32
    %c0_i32_0 = arith.constant 0 : i32
    %c0_i32_1 = arith.constant 0 : i32
    return %arg0, %c0_i32, %c0_i32_0 : i32, i32, i32
  }
  func.func @transform_2(%arg0: i32) -> (i32, i32, i32) {
    %c0_i32 = arith.constant 0 : i32
    %c0_i32_0 = arith.constant 0 : i32
    %c0_i32_1 = arith.constant 0 : i32
    return %arg0, %c0_i32, %c0_i32_0 : i32, i32, i32
  }
  func.func @transform_3(%arg0: i32) -> (i32, i32, i32) {
    %c0_i32 = arith.constant 0 : i32
    %c0_i32_0 = arith.constant 0 : i32
    %c0_i32_1 = arith.constant 0 : i32
    %c0_i32_2 = arith.constant 0 : i32
    return %c0_i32, %c0_i32_0, %c0_i32_1 : i32, i32, i32
  }
  func.func @transform_4(%arg0: i32) -> (i32, i32, i32) {
    %c0_i32 = arith.constant 0 : i32
    %c0_i32_0 = arith.constant 0 : i32
    %c0_i32_1 = arith.constant 0 : i32
    %c0_i32_2 = arith.constant 0 : i32
    return %c0_i32, %c0_i32_0, %c0_i32_1 : i32, i32, i32
  }
  func.func @transform_5(%arg0: i32) -> (i32, i32, i32) {
    %c0_i32 = arith.constant 0 : i32
    %c0_i32_0 = arith.constant 0 : i32
    %c0_i32_1 = arith.constant 0 : i32
    %c0_i32_2 = arith.constant 0 : i32
    return %c0_i32, %c0_i32_0, %c0_i32_1 : i32, i32, i32
  }
  func.func @transform_6(%arg0: i32) -> (i32, i32, i32) {
    %c0_i32 = arith.constant 0 : i32
    %c0_i32_0 = arith.constant 0 : i32
    %c0_i32_1 = arith.constant 0 : i32
    %c0_i32_2 = arith.constant 0 : i32
    return %c0_i32, %c0_i32_0, %c0_i32_1 : i32, i32, i32
  }
  func.func @transform_7(%arg0: i32) -> (i32, i32, i32) {
    %c0_i32 = arith.constant 0 : i32
    %c0_i32_0 = arith.constant 0 : i32
    %c0_i32_1 = arith.constant 0 : i32
    return %arg0, %c0_i32, %c0_i32_0 : i32, i32, i32
  }
}

</mosaic_0001>

<bundles_post_ra>
// kernel: two_tower_forward.4
= control target key start
LH: loop header
LB: loop body
LE: loop exit
PB: predicated region body
PF: predicated region fallthrough
CT: control target
= control target key end

     0   :  { %vm37_vm0 = vcmask 392192   ;;  %vm129_vm1 = vcmask 261120   ;;  %s229_s1 = inlined_call_operand.vmem [shape: f32[48,32], index: 1, kind: input, shape index: {}]   ;;  %s230_s0 = inlined_call_operand.vmem [shape: f32[32,48], index: 0, kind: input, shape index: {}]   ;;  %s231_s2 = inlined_call_operand.vmem [shape: f32[1,32], index: 2, kind: input, shape index: {}]   ;;  %s232_s3 = inlined_call_operand.vmem [shape: f32[32,32], index: 3, kind: output, shape index: {}]  }
   0x1   :  { %v21_v0 = vld [vmem:[%s229_s1] sm:$0xff]  ;;  %v22_v1 = vld [vmem:[%s229_s1 + $0x8] sm:$0xff]  ;;  %v23_v2 = vld [vmem:[%s229_s1 + $0x10] sm:$0xff] }
   0x2   :  { %v27_v3 = vpack.c.bf16 %v22_v1, %v21_v0  ;;  %v24_v4 = vld [vmem:[%s229_s1 + $0x18] sm:$0xff]  ;;  %v25_v5 = vld [vmem:[%s229_s1 + $0x20] sm:$0xff]  ;;  %v26_v7 = vld [vmem:[%s229_s1 + $0x28] sm:$0xff] }
   0x3   :  { %v28_v6 = vpack.c.bf16 %v24_v4, %v23_v2  ;;  %v15_v8 = vld [vmem:[%s230_s0] sm:$0xff]  ;;  %v16_v9 = vld [vmem:[%s230_s0 + $0x8] sm:$0xff]  ;;  %v29_v11 = vpack.c.bf16 %v26_v7, %v25_v5  ;;  %v17_v12 = vld [vmem:[%s230_s0 + $0x10] sm:$0xff] }
   0x4   :  { %146 = vmatprep.subr.bf16.mxu0 %v27_v3  ;;  %v19_v10 = vpack.c.bf16 %v16_v9, %v15_v8  ;;  %v18_v13 = vld [vmem:[%s230_s0 + $0x18] sm:$0xff]  ;;  %v138_v15 = vld [vmem:[%s231_s2] ss:$0 sm:$0xff] }
   0x5   :  { %147 = vmatpush3.bf16.msra.mxu0 %v27_v3  ;;  %v20_v14 = vpack.c.bf16 %v18_v13, %v17_v12 }
   0x6   :  { %148 = vmatprep.subr.bf16.mxu0 %v28_v6  ;;  %152 = vmatprep.mubr.msk.bf16.mxu0 %vm37_vm0, %v19_v10 }
   0x9   :  { %149 = vmatpush3.bf16.msra.mxu0 %v28_v6 }
   0xa   :  { %150 = vmatprep.subr.bf16.mxu0 %v29_v11 }
   0xd   :  { %151 = vmatpush3.bf16.msra.mxu0 %v29_v11 }
  0x10   :  { %153 = vmatmul.mubr.msk.bf16.vlgmr.msra.gmra.mrb[0].mxu0 %vm37_vm0, %v20_v14 }
  0xe3   :  { %v154_v16 = vpop.f32.mrb[0].mxu0 }
  0xe4   :  { %v87_v17 = vadd.f32 %v154_v16, %v138_v15  ;;  %v78_v18 = vpop.f32.mrb[1].mxu0 }
  0xe5   :  { %v79_v19 = vadd.f32 %v138_v15, %v78_v18  ;;  %v155_v20 = vpop.f32.mrb[2].mxu0 }
  0xe6   :  { %v99_v21 = vmul.f32 0.044715, %v87_v17  ;;  %v90_v22 = vadd.f32 %v155_v20, %v138_v15  ;;  %v81_v23 = vpop.f32.mrb[3].mxu0  ;;  %v95_v46 = vmul.f32 0.5, %v87_v17 }
  0xe7   :  { %v97_v24 = vmul.f32 0.044715, %v79_v19  ;;  %v82_v25 = vadd.f32 %v138_v15, %v81_v23  ;;  %v93_v49 = vmul.f32 0.5, %v79_v19 }
  0xe8   :  { %v103_v26 = vmul.f32 %v99_v21, %v87_v17  ;;  %v100_v27 = vmul.f32 0.044715, %v90_v22  ;;  %v96_v53 = vmul.f32 0.5, %v90_v22 }
  0xe9   :  { %v101_v28 = vmul.f32 %v97_v24, %v79_v19  ;;  %v98_v29 = vmul.f32 0.044715, %v82_v25  ;;  %v94_v56 = vmul.f32 0.5, %v82_v25 }
  0xea   :  { %v107_v30 = vmul.f32 %v103_v26, %v87_v17  ;;  %v104_v31 = vmul.f32 %v100_v27, %v90_v22 }
  0xeb   :  { %v105_v32 = vmul.f32 %v101_v28, %v79_v19  ;;  %v102_v33 = vmul.f32 %v98_v29, %v82_v25 }
  0xec   :  { %v111_v34 = vadd.f32 %v107_v30, %v87_v17  ;;  %v108_v35 = vmul.f32 %v104_v31, %v90_v22 }
  0xed   :  { %v109_v36 = vadd.f32 %v105_v32, %v79_v19  ;;  %v106_v37 = vmul.f32 %v102_v33, %v82_v25 }
  0xee   :  { %v115_v38 = vmul.f32 0.7978846, %v111_v34  ;;  %v112_v39 = vadd.f32 %v108_v35, %v90_v22 }
  0xef   :  { %v113_v40 = vmul.f32 0.7978846, %v109_v36  ;;  %v110_v41 = vadd.f32 %v106_v37, %v82_v25 }
  0xf0   :  { %156 = vtanh.f32 %v115_v38  ;;  %v116_v42 = vmul.f32 0.7978846, %v112_v39 }
  0xf1   :  { %158 = vtanh.f32 %v113_v40  ;;  %v114_v43 = vmul.f32 0.7978846, %v110_v41 }
  0xf2   :  { %160 = vtanh.f32 %v116_v42 }
  0xf3   :  { %162 = vtanh.f32 %v114_v43 }
  0xfa   :  { %v157_v44 = vpop.eup %156 }
  0xfb   :  { %v159_v45 = vpop.eup %158  ;;  %v123_v47 = vadd.f32 1.0, %v157_v44 }
  0xfc   :  { %v161_v48 = vpop.eup %160  ;;  %v121_v50 = vadd.f32 1.0, %v159_v45 }
  0xfd   :  { %v163_v51 = vpop.eup %162  ;;  %v127_v52 = vmul.f32 %v123_v47, %v95_v46  ;;  %v124_v54 = vadd.f32 1.0, %v161_v48 }
  0xfe   :  { %v125_v55 = vmul.f32 %v121_v50, %v93_v49  ;;  %v122_v57 = vadd.f32 1.0, %v163_v51 }
  0xff   :  { %132 = vst.msk [vmem:[%s232_s3 + $0x10] sm:$0xff] %vm129_vm1, %v127_v52  ;;  %v128_v58 = vmul.f32 %v124_v54, %v96_v53 }
 0x100   :  { %130 = vst.msk [vmem:[%s232_s3] sm:$0xff] %vm129_vm1, %v125_v55  ;;  %v126_v59 = vmul.f32 %v122_v57, %v94_v56 }
 0x101   :  { %133 = vst.msk [vmem:[%s232_s3 + $0x18] sm:$0xff] %vm129_vm1, %v128_v58 }
 0x102   :  { %131 = vst.msk [vmem:[%s232_s3 + $0x8] sm:$0xff] %vm129_vm1, %v126_v59 }

// kernel: two_tower_forward.3
= control target key start
LH: loop header
LB: loop body
LE: loop exit
PB: predicated region body
PF: predicated region fallthrough
CT: control target
= control target key end

     0   :  { %v118_v0 = vmov 0.0   ;;  %vm119_vm0 = vmmov 0   ;;  %vm36_vm1 = vcmask 523264   ;;  %vm89_vm2 = vcmask 254976   ;;  %s173_s1 = inlined_call_operand.vmem [shape: f32[64,32], index: 1, kind: input, shape index: {}]   ;;  %s174_s0 = inlined_call_operand.vmem [shape: f32[2,64], index: 0, kind: input, shape index: {}]   ;;  %s175_s2 = inlined_call_operand.vmem [shape: f32[1,32], index: 2, kind: input, shape index: {}]   ;;  %s176_s3 = inlined_call_operand.vmem [shape: f32[2,32], index: 3, kind: output, shape index: {}]  }
   0x1   :  { %102 = vmatprep.subr.bf16.mxu0 %v118_v0  ;;  %v17_v1 = vld [vmem:[%s173_s1] sm:$0xff]  ;;  %v18_v2 = vld [vmem:[%s173_s1 + $0x8] sm:$0xff]  ;;  %v19_v3 = vld [vmem:[%s173_s1 + $0x10] sm:$0xff]  ;;  %110 = vmatprep.mubr.msk.bf16.mxu0 %vm119_vm0, %v118_v0 }
   0x2   :  { %v25_v4 = vpack.c.bf16 %v18_v2, %v17_v1  ;;  %v20_v5 = vld [vmem:[%s173_s1 + $0x18] sm:$0xff]  ;;  %v21_v7 = vld [vmem:[%s173_s1 + $0x20] sm:$0xff]  ;;  %v22_v8 = vld [vmem:[%s173_s1 + $0x28] sm:$0xff] }
   0x3   :  { %v26_v6 = vpack.c.bf16 %v20_v5, %v19_v3  ;;  %v27_v9 = vpack.c.bf16 %v22_v8, %v21_v7  ;;  %v23_v10 = vld [vmem:[%s173_s1 + $0x30] sm:$0xff]  ;;  %v24_v11 = vld [vmem:[%s173_s1 + $0x38] sm:$0xff]  ;;  %v15_v13 = vld [vmem:[%s174_s0] sm:$0x3] }
   0x4   :  { %103 = vmatpush3.bf16.msra.mxu0 %v25_v4  ;;  %v28_v12 = vpack.c.bf16 %v24_v11, %v23_v10  ;;  %v16_v14 = vpack.c.bf16 %v15_v13, %v15_v13  ;;  %v95_v15 = vld [vmem:[%s175_s2] ss:$0 sm:$0xff] }
   0x5   :  { %104 = vmatprep.subr.bf16.mxu0 %v118_v0 }
   0x8   :  { %105 = vmatpush3.bf16.msra.mxu0 %v26_v6 }
   0x9   :  { %106 = vmatprep.subr.bf16.mxu0 %v118_v0 }
   0xc   :  { %107 = vmatpush3.bf16.msra.mxu0 %v27_v9 }
   0xd   :  { %108 = vmatprep.subr.bf16.mxu0 %v118_v0 }
  0x10   :  { %109 = vmatpush3.bf16.msra.mxu0 %v28_v12 }
  0x13   :  { %111 = vmatmul.mubr.msk.bf16.vlgmr.msra.gmra.mrb[0].mxu0 %vm36_vm1, %v16_v14 }
  0xe6   :  { %v74_v16 = vpop.f32.mrb[0].mxu0 }
  0xe7   :  { %v75_v17 = vadd.f32 %v95_v15, %v74_v16  ;;  %v112_v18 = vpop.f32.mrb[1].mxu0 }
  0xe8   :  { %v77_v19 = vpop.f32.mrb[2].mxu0 }
  0xe9   :  { %v81_v20 = vmul.f32 0.044715, %v75_v17  ;;  %v113_v21 = vpop.f32.mrb[3].mxu0  ;;  %v80_v27 = vmul.f32 0.5, %v75_v17 }
  0xeb   :  { %v82_v22 = vmul.f32 %v81_v20, %v75_v17 }
  0xed   :  { %v83_v23 = vmul.f32 %v82_v22, %v75_v17 }
  0xef   :  { %v84_v24 = vadd.f32 %v83_v23, %v75_v17 }
  0xf1   :  { %v85_v25 = vmul.f32 0.7978846, %v84_v24 }
  0xf3   :  { %116 = vtanh.f32 %v85_v25 }
  0xfd   :  { %v117_v26 = vpop.eup %116 }
  0xfe   :  { %v87_v28 = vadd.f32 1.0, %v117_v26 }
 0x100   :  { %v88_v29 = vmul.f32 %v87_v28, %v80_v27 }
 0x102   :  { %90 = vst.msk [vmem:[%s176_s3] sm:$0x3] %vm89_vm2, %v88_v29 }

// kernel: two_tower_forward.5
= control target key start
LH: loop header
LB: loop body
LE: loop exit
PB: predicated region body
PF: predicated region fallthrough
CT: control target
= control target key end

     0   :  { %12 = vsyncpa [#allocation3], 0  ;;  %s1973_s0 = inlined_call_operand.vmem [shape: f32[2,16,32], index: 0, kind: input, shape index: {}]   ;;  %s1974_s1 = inlined_call_operand.vmem [shape: s8[2,16,16], index: 1, kind: input, shape index: {}]   ;;  %s1975_s2 = inlined_call_operand.vmem [shape: f32[2,1,32], index: 2, kind: input, shape index: {}]   ;;  %s1976_s3 = inlined_call_operand.vmem [shape: f32[2,32,32], index: 3, kind: input, shape index: {}]   ;;  %s1977_s4 = inlined_call_operand.vmem [shape: f32[2,32,2], index: 4, kind: input, shape index: {}]   ;;  %s1978_s5 = inlined_call_operand.vmem [shape: f32[2,2,32], index: 5, kind: input, shape index: {}]   ;;  %s1979_s6 = inlined_call_operand.vmem [shape: f32[2,1,32], index: 6, kind: input, shape index: {}]   ;;  %s1980_s7 = inlined_call_operand.hbm [shape: f32[2,1,16], index: 7, kind: output, shape index: {}]  }
   0x1   :  { %14 = vsyncpa [#allocation3 + $0x1], 0  ;;  %s1691_s24 = smov 0   ;;  %s1693_s25 = smov 0  }
   0x2   :  { %s1695_s26 = smov 0   ;;  %s1697_s27 = smov 0  }
   0x3 LB: > { %s1712_s28 = sadd.s32 4294967295, %s1641_s27   ;;  %s1316_s29 = sadd.s32 4294967294, %s1641_s27   ;;  %s1641_s27 = sphi %s1697_s27, %s1986_s27   ;;  %s1637_s26 = sphi %s1695_s26, %s1985_s26   ;;  %s1633_s25 = sphi %s1693_s25, %s1984_s25   ;;  %s1629_s24 = sphi %s1691_s24, %s1983_s24  }
   0x4   : > { %s1716_s30 = sadd.s32 1, %s1641_s27   ;;  %s189_s8 = sadd.s32 1, %s1637_s26 }
   0x5   : > { %s186_s9 = ssub.s32 %s1641_s27, %s1716_s30  ;;  %p199_p0 = scmp.ne.s32.totalorder %s1637_s26, %s1633_s25 }
   0x6   : > { %p187_p1 = scmp.eq.s32.totalorder %s186_s9, 0  ;;  %p200_p2 = scmp.eq.s32.totalorder %s1712_s28, 1 }
   0x7   : > { %p205_p3 = scmp.ne.s32.totalorder %s1633_s25, %s1629_s24  ;;  %p206_p4 = scmp.eq.s32.totalorder %s1316_s29, 1 }
   0x8   : > { %s1727_s10 = scalar_select %p187_p1, %s1637_s26, %s189_s8  }
   0x9   : > { %p1729_p5 = por %p200_p2, %p199_p0  ;;  %p1733_p6 = por %p206_p4, %p205_p3 }
   0xa   : > { %p1319_p7 = scmp.ge.s32.totalorder %s1641_s27, 1  ;;  %p258_p8 = scmp.lt.s32.totalorder %s1641_s27, 3 }
   0xc   : > { %p259_p9 = pnand %p1319_p7, %p258_p8 }
   0xd   : > { %v335_v0 = vld [vmem:[%s1976_s3] sm:$0xff] (!%p259_p9)  ;;  %v336_v1 = vld [vmem:[%s1976_s3 + $0x8] sm:$0xff] (!%p259_p9)  ;;  %v337_v2 = vld [vmem:[%s1976_s3 + $0x10] sm:$0xff] (!%p259_p9)  ;;  %p297_p10 = scmp.lt.s32.totalorder (!%p259_p9), %s1712_s28, 1  ;;  %v1643_v3 = vmov (!%p259_p9), 0.0   ;;  %vm1644_vm0 = vmmov (!%p259_p9), 0   ;;  %v323_v18 = vlaneseq (!%p259_p9) }
   0xe   : > { %262 = sbr.rel (%p259_p9) target bundleno = 2534 (0x9e6), region = 48  ;;  %1396 = vmatprep.subr.bf16.mxu0 (!%p259_p9), %v1643_v3  ;;  %v339_v4 = vpack.c.bf16 (!%p259_p9), %v336_v1, %v335_v0  ;;  %v338_v5 = vld [vmem:[%s1976_s3 + $0x18] sm:$0xff] (!%p259_p9)  ;;  %1400 = vmatprep.mubr.msk.bf16.mxu0 (!%p259_p9), %vm1644_vm0, %v1643_v3  ;;  %v341_v6 = vld [vmem:[%s1977_s4] sm:$0xff] (!%p259_p9)  ;;  %v342_v7 = vld [vmem:[%s1977_s4 + $0x8] sm:$0xff] (!%p259_p9)  ;;  %vm351_vm1 = vcmask (!%p259_p9), 261120   ;;  %v1645_v16 = vmov (!%p259_p9), 1  }
   0xf   : > { %1404 = vmatprep.subr.bf16.mxu1 (!%p259_p9), %v1643_v3  ;;  %v345_v8 = vpack.c.bf16 (!%p259_p9), %v342_v7, %v341_v6  ;;  %1408 = vmatprep.mubr.msk.bf16.mxu1 (!%p259_p9), %vm1644_vm0, %v1643_v3  ;;  %v340_v9 = vpack.c.bf16 (!%p259_p9), %v338_v5, %v337_v2  ;;  %v343_v13 = vld [vmem:[%s1977_s4 + $0x10] sm:$0xff] (!%p259_p9)  ;;  %v344_v14 = vld [vmem:[%s1977_s4 + $0x18] sm:$0xff] (!%p259_p9)  ;;  %v1646_v17 = vmov (!%p259_p9), 0   ;;  %v324_v19 = vand.u32 (!%p259_p9), 127, %v323_v18  ;;  %v347_v34 = vld [vmem:[%s1978_s5] sm:$0x3] (!%p259_p9) }
  0x10   : > { %1397 = vmatpush3.bf16.msra.mxu0 (!%p259_p9), %v339_v4  ;;  %v346_v15 = vpack.c.bf16 (!%p259_p9), %v344_v14, %v343_v13  ;;  %1533 = vset.pattern.permute.xlu1 (!%p259_p9), %v1645_v16  ;;  %v348_v35 = vpack.c.bf16 (!%p259_p9), %v347_v34, %v347_v34  ;;  %v1812_v45 = vshrl.u32 (!%p259_p9), %v323_v18, 7  ;;  %v1647_v58 = vmov (!%p259_p9), -1e+30  }
  0x11   : > { %1398 = vmatprep.subr.bf16.mxu0 (!%p259_p9), %v1643_v3  ;;  %1405 = vmatpush3.bf16.msra.mxu1 (!%p259_p9), %v345_v8  ;;  %vm330_vm2 = vcmp.ge.s32.totalorder (!%p259_p9), %v324_v19, 16  ;;  %vm331_vm3 = vcmp.lt.s32.totalorder (!%p259_p9), %v324_v19, 32  ;;  %vm326_vm4 = vcmp.lt.s32.totalorder (!%p259_p9), %v324_v19, 16  ;;  %vm508_vm10 = vcmask (!%p259_p9), 130048  }
  0x12   : > { %1406 = vmatprep.subr.bf16.mxu1 (!%p259_p9), %v1643_v3  ;;  %1532 = vset.pattern.permute.xlu0 (!%p259_p9), %v1646_v17  ;;  %vm332_vm5 = vmand (!%p259_p9), %vm330_vm2, %vm331_vm3  ;;  %v1786_v20 = vsel (!%p259_p9), %vm326_vm4, 1.0, %v1643_v3  ;;  %v496_v47 = vsub.s32 (!%p259_p9), 0, %v1812_v45  ;;  %v545_v48 = vsub.s32 (!%p259_p9), 1, %v1812_v45 }
  0x13   : > { %v1789_v21 = vsel (!%p259_p9), %vm332_vm5, 1.0, %v1643_v3  ;;  %vm1199_vm5 = vcmask (!%p259_p9), 253952  }
  0x14   : > { %1399 = vmatpush3.bf16.msra.mxu0 (!%p259_p9), %v340_v9 }
  0x15   : > { %s1762_s8 = scalar_select %p297_p10, %s1712_s28, 1  ;;  %1412 = vmatprep.subr.bf16.mxu0 %v1643_v3  ;;  %1407 = vmatpush3.bf16.msra.mxu1 %v346_v15 }
  0x16   : > { %1418 = vmatprep.subr.bf16.mxu1 %v1643_v3 }
  0x17   : > { %s1360_s9 = sshll.u32 %s1762_s8, 4  ;;  %s1361_s22 = sshll.u32 %s1762_s8, 2 }
  0x18   : > { %s301_s15 = scalar_lea.vmem %s1973_s0, %s1360_s9  ;;  %s306_s9 = scalar_lea.vmem %s1974_s1, %s1361_s22 }
  0x19   : > { %v311_v10 = vld [vmem:[%s301_s15] sm:$0xff]  ;;  %v312_v11 = vld [vmem:[%s301_s15 + $0x8] sm:$0xff]  ;;  %s309_s22 = scalar_lea.vmem %s1975_s2, %s1762_s8  ;;  %s295_s8 = sand.u32 1, %s1633_s25  }
  0x1a   : > { %v350_v12 = vpack.c.bf16 %v312_v11, %v311_v10  ;;  %v1363_v44 = vld [vmem:[%s306_s9] sm:$0xf]   ;;  %s1357_s9 = sshll.u32 %s1712_s28, 4  ;;  %s296_s13 = scalar_lea.vmem [#allocation2], %s295_s8 }
  0x1b   : > { %v1364_v46 = vunpack.c.0.s8 %v1363_v44  ;;  %v1365_v49 = vunpack.c.1.s8 %v1363_v44  ;;  %s1240_s14 = sshll.u32 %s296_s13, 4  ;;  %s1931_s17 = scalar_lea.hbm %s1980_s7, %s1357_s9  ;;  %s1933_s14 = int_to_ptr.vmem [resolvable:$true] %s1240_s14 }
  0x1c   : > { %1401 = vmatmul.mubr.msk.bf16.vlgmr.msra.gmra.mrb[0].mxu0 %vm351_vm1, %v350_v12  ;;  %s1228_s18 = scalar_lea.sflag [#allocation3], %s295_s8  ;;  %s1579_s19 = scalar_lea.vmem %s1933_s14, 16 }
  0x1d   : > { %1414 = vmatprep.mubr.msk.bf16.mxu0 %vm1644_vm0, %v1643_v3  ;;  %v317_v50 = vcvt.s32.f32 %v1364_v46  ;;  %v318_v53 = vcvt.s32.f32 %v1365_v49  ;;  %p1580_p11 = scmp.ne.s32.totalorder %s1933_s14, %s1579_s19  ;;  %s1650_s28 = smov [#allocation2]  }
  0x1e   : > { %s1583_s20 = sshll.u32 %s1650_s28, 4  ;;  %s1584_s20 = int_to_ptr.vmem [resolvable:$false] %s1583_s20 }
  0x1f   : > { %vm319_vm6 = vcmp.gt.f32.partialorder %v317_v50, 0.0  ;;  %vm320_vm7 = vcmp.gt.f32.partialorder %v318_v53, 0.0  ;;  %p1581_p12 = pnand %p1580_p11, %p1729_p5  ;;  %s1585_s21 = scalar_lea.vmem %s1584_s20, 32 }
  0x20   : > { %v1820_v59 = vsel %vm319_vm6, 0.0, %v1647_v58  ;;  %v1823_v6 = vsel %vm320_vm7, 0.0, %v1647_v58  ;;  %v1334_v58 = vld [vmem:[%s1976_s3 + $0x20] sm:$0xff]  ;;  %p1586_p0 = scmp.lt.s32.totalorder %s1933_s14, %s1584_s20  ;;  %p1587_p1 = scmp.lt.s32.totalorder %s1585_s21, %s1579_s19 }
  0x21   : > { %p1582_p13 = pneg %p1581_p12 }
  0x22   : > { %p1588_p2 = por %p1587_p1, %p1586_p0 }
  0x24   : > { %p1589_p3 = pnand %p1588_p2, %p1582_p13 }
  0xef   : > { %v389_v22 = vpop.f32.mrb[0].mxu0 }
  0xf0   : > { %v1402_v23 = vpop.f32.mrb[1].mxu0  ;;  %v531_v24 = vmul.f32 %v1786_v20, %v389_v22  ;;  %v579_v26 = vmul.f32 %v1789_v21, %v389_v22 }
  0xf1   : > { %v392_v25 = vpop.f32.mrb[2].mxu0 }
  0xf2   : > { %v396_v27 = vpack.c.bf16 %v392_v25, %v389_v22  ;;  %v532_v28 = vmul.f32 %v1786_v20, %v392_v25  ;;  %v580_v29 = vmul.f32 %v1789_v21, %v392_v25  ;;  %v1403_v30 = vpop.f32.mrb[3].mxu0 }
  0xf4   : > { %v534_v31 = vpack.c.bf16 %v532_v28, %v531_v24  ;;  %v582_v32 = vpack.c.bf16 %v580_v29, %v579_v26  ;;  %1409 = vmatmul.mubr.msk.bf16.vlgmr.msra.gmra.mrb[0].mxu1 %vm351_vm1, %v396_v27  ;;  %v398_v33 = vsel %vm351_vm1, %v396_v27, 0 }
  0xf5   : > { %1413 = vmatpush3.bf16.xpose.msra.mxu0 %v398_v33  ;;  %1420 = vmatprep.mubr.msk.bf16.mxu1 %vm1644_vm0, %v1643_v3 }
  0xf6   : > { %1419 = vmatpush3.bf16.msra.mxu1 %v582_v32  ;;  %1424 = vmatprep.subr.bf16.mxu0 %v1643_v3 }
  0xf7   : > { %1430 = vmatprep.subr.bf16.mxu1 %v1643_v3 }
  0xfc   : > { %1415 = vmatmul.mubr.msk.bf16.vlgmr.msra.gmra.mrb[4].mxu0 %vm351_vm1, %v348_v35 }
  0xfd   : > { %1425 = vmatpush3.bf16.msra.mxu0 %v534_v31  ;;  %1426 = vmatprep.mubr.msk.bf16.mxu0 %vm1644_vm0, %v1643_v3 }
  0xfe   : > { %1438 = vmatprep.subr.bf16.mxu0 %v1643_v3 }
 0x1c7   : > { %v434_v36 = vpop.f32.mrb[0].mxu1 }
 0x1c8   : > { %536 = vperm.xlu1 %1533, %v434_v36   ;;  %486 = vperm.xlu0 %1532, %v434_v36   ;;  %v1410_v37 = vpop.f32.mrb[1].mxu1 }
 0x1c9   : > { %v437_v38 = vpop.f32.mrb[2].mxu1 }
 0x1ca   : > { %v1411_v39 = vpop.f32.mrb[3].mxu1 }
 0x1cc   : > { %540 = vperm.xlu1 %1533, %v437_v38   ;;  %491 = vperm.xlu0 %1532, %v437_v38  }
 0x1cf   : > { %v478_v40 = vpop.f32.mrb[4].mxu0 }
 0x1d0   : > { %v1416_v41 = vpop.f32.mrb[5].mxu0  ;;  %1534 = vset.pattern.permute.xlu1 %v1646_v17  ;;  %v497_v51 = vrot.slane %v478_v40, %v496_v47  ;;  %v546_v52 = vrot.slane %v478_v40, %v545_v48 }
 0x1d1   : > { %v481_v42 = vpop.f32.mrb[6].mxu0 }
 0x1d2   : > { %v1417_v43 = vpop.f32.mrb[7].mxu0 }
 0x247   : > { %v537_v54 = vpop.permute.xlu1 %536  ;;  %v487_v55 = vpop.permute.xlu0 %486 }
 0x248   : > { %v547_v56 = vadd.f32 %v546_v52, %v537_v54  ;;  %v498_v57 = vadd.f32 %v497_v51, %v487_v55 }
 0x24a   : > { %vm549_vm8 = vcmp.gt.f32.partialorder %v547_v56, 0.0  ;;  %v551_v60 = vmul.f32 0.2, %v547_v56  ;;  %vm500_vm9 = vcmp.gt.f32.partialorder %v498_v57, 0.0  ;;  %v502_v61 = vmul.f32 0.2, %v498_v57 }
 0x24b   : > { %v541_v62 = vpop.permute.xlu1 %540  ;;  %v492_v63 = vpop.permute.xlu0 %491 }
 0x24c   : > { %v548_v0 = vadd.f32 %v546_v52, %v541_v62  ;;  %v499_v1 = vadd.f32 %v497_v51, %v492_v63  ;;  %v504_v2 = vsel %vm500_vm9, %v498_v57, %v502_v61  ;;  %v553_v4 = vsel %vm549_vm8, %v547_v56, %v551_v60  ;;  %v1335_v60 = vld [vmem:[%s1976_s3 + $0x28] sm:$0xff]  ;;  %v1336_v62 = vld [vmem:[%s1976_s3 + $0x30] sm:$0xff]  ;;  %v1337_v63 = vld [vmem:[%s1976_s3 + $0x38] sm:$0xff] }
 0x24d   : > { %v506_v5 = vadd.f32 %v504_v2, %v1820_v59  ;;  %v555_v10 = vadd.f32 %v553_v4, %v1820_v59  ;;  %v696_v61 = vpack.c.bf16 %v1335_v60, %v1334_v58  ;;  %v1339_v2 = vld [vmem:[%s1977_s4 + $0x28] sm:$0xff]  ;;  %vm1225_vm9 = vcmask 122880  }
 0x24e   : > { %vm550_vm11 = vcmp.gt.f32.partialorder %v548_v0, 0.0  ;;  %v552_v7 = vmul.f32 0.2, %v548_v0  ;;  %vm501_vm12 = vcmp.gt.f32.partialorder %v499_v1, 0.0  ;;  %v503_v8 = vmul.f32 0.2, %v499_v1 }
 0x24f   : > { %v509_v9 = vsel %vm508_vm10, %v506_v5, -inf  ;;  %v557_v15 = vsel %vm508_vm10, %v555_v10, -inf }
 0x250   : > { %510 = vmax.xlane.f32.xlu0 %v509_v9  ;;  %v505_v11 = vsel %vm501_vm12, %v499_v1, %v503_v8  ;;  %v554_v12 = vsel %vm550_vm11, %v548_v0, %v552_v7  ;;  %v697_v0 = vpack.c.bf16 %v1337_v63, %v1336_v62  ;;  %v1338_v1 = vld [vmem:[%s1977_s4 + $0x20] sm:$0xff] }
 0x251   : > { %v507_v13 = vadd.f32 %v505_v11, %v1823_v6  ;;  %v556_v17 = vadd.f32 %v554_v12, %v1823_v6  ;;  %v703_v4 = vpack.c.bf16 %v1339_v2, %v1338_v1 }
 0x253   : > { %v512_v14 = vsel %vm508_vm10, %v507_v13, -inf  ;;  %v560_v18 = vsel %vm508_vm10, %v556_v17, -inf }
 0x254   : > { %513 = vmax.xlane.f32.xlu1 %v512_v14  ;;  %558 = vmax.xlane.f32.xlu0 %v557_v15 }
 0x258   : > { %561 = vmax.xlane.f32.xlu0 %v560_v18 }
 0x2dd   : > { %v511_v19 = vpop.xlane.xlu0 %510 }
 0x2de   : > { %v515_v22 = vsub.f32 %v506_v5, %v511_v19 }
 0x2e0   : > { %v517_v23 = vmul.f32 1.442695, %v515_v22 }
 0x2e1   : > { %v514_v24 = vpop.xlane.xlu1 %513  ;;  %v559_v25 = vpop.xlane.xlu0 %558 }
 0x2e2   : > { %1537 = vpow2.f32 %v517_v23  ;;  %v516_v26 = vsub.f32 %v507_v13, %v514_v24  ;;  %v563_v27 = vsub.f32 %v555_v10, %v559_v25  ;;  %v1331_v10 = vld [vmem:[%s1979_s6] ss:$0 sm:$0xff] }
 0x2e4   : > { %v519_v28 = vmul.f32 1.442695, %v516_v26  ;;  %v565_v29 = vmul.f32 1.442695, %v563_v27 }
 0x2e5   : > { %v562_v30 = vpop.xlane.xlu0 %561 }
 0x2e6   : > { %1539 = vpow2.f32 %v519_v28  ;;  %v564_v31 = vsub.f32 %v556_v17, %v562_v30 }
 0x2e7   : > { %1541 = vpow2.f32 %v565_v29 }
 0x2e8   : > { %v567_v32 = vmul.f32 1.442695, %v564_v31 }
 0x2ea   : > { %1543 = vpow2.f32 %v567_v32 }
 0x2ec   : > { %v1538_v33 = vpop.eup %1537 }
 0x2ed   : > { %v521_v34 = vsel %vm508_vm10, %v1538_v33, 0.0 }
 0x2ee   : > { %522 = vadd.xlane.f32.xlu1 %v521_v34  ;;  %v1341_v34 = vld [vmem:[%s1977_s4 + $0x38] sm:$0xff] }
 0x2f0   : > { %v1540_v35 = vpop.eup %1539 }
 0x2f1   : > { %v1542_v36 = vpop.eup %1541  ;;  %v524_v37 = vsel %vm508_vm10, %v1540_v35, 0.0 }
 0x2f2   : > { %525 = vadd.xlane.f32.xlu0 %v524_v37  ;;  %v569_v38 = vsel %vm508_vm10, %v1542_v36, 0.0 }
 0x2f3   : > { %570 = vadd.xlane.f32.xlu1 %v569_v38 }
 0x2f4   : > { %v1544_v39 = vpop.eup %1543 }
 0x2f5   : > { %v572_v40 = vsel %vm508_vm10, %v1544_v39, 0.0 }
 0x2f6   : > { %573 = vadd.xlane.f32.xlu0 %v572_v40 }
 0x37b   : > { %v523_v41 = vpop.xlane.xlu1 %522 }
 0x37c   : > { %1545 = vrcp.f32 %v523_v41 }
 0x37f   : > { %v526_v42 = vpop.xlane.xlu0 %525 }
 0x380   : > { %v571_v43 = vpop.xlane.xlu1 %570  ;;  %1547 = vrcp.f32 %v526_v42 }
 0x381   : > { %1549 = vrcp.f32 %v571_v43 }
 0x383   : > { %v574_v44 = vpop.xlane.xlu0 %573 }
 0x384   : > { %1551 = vrcp.f32 %v574_v44 }
 0x386   : > { %v1546_v46 = vpop.eup %1545 }
 0x387   : > { %v529_v50 = vmul.f32 %v1546_v46, %v1538_v33  ;;  %v1340_v33 = vld [vmem:[%s1977_s4 + $0x30] sm:$0xff] }
 0x38a   : > { %v1548_v49 = vpop.eup %1547 }
 0x38b   : > { %v530_v51 = vmul.f32 %v1548_v49, %v1540_v35  ;;  %v1550_v52 = vpop.eup %1549  ;;  %v704_v35 = vpack.c.bf16 %v1341_v34, %v1340_v33 }
 0x38c   : > { %v577_v55 = vmul.f32 %v1550_v52, %v1542_v36 }
 0x38d   : > { %v533_v53 = vpack.c.bf16 %v530_v51, %v529_v50  ;;  %v1342_v51 = vld [vmem:[%s1978_s5 + $0x2] sm:$0x3] }
 0x38e   : > { %v1552_v54 = vpop.eup %1551 }
 0x38f   : > { %v578_v56 = vmul.f32 %v1552_v54, %v1544_v39  ;;  %1427 = vmatmul.mubr.msk.bf16.vlgmr.msra.gmra.mrb[8].mxu0 %vm508_vm10, %v533_v53 }
 0x390   : > { %1442 = vmatprep.mubr.msk.bf16.mxu0 %vm1644_vm0, %v1643_v3  ;;  %1439 = vmatpush3.bf16.msra.mxu0 %v703_v4 }
 0x391   : > { %v581_v57 = vpack.c.bf16 %v578_v56, %v577_v55  ;;  %1440 = vmatprep.subr.bf16.mxu0 %v1643_v3 }
 0x393   : > { %1421 = vmatmul.mubr.msk.bf16.vlgmr.msra.gmra.mrb[4].mxu1 %vm508_vm10, %v581_v57 }
 0x394   : > { %1434 = vmatprep.mubr.msk.bf16.mxu1 %vm1644_vm0, %v1643_v3  ;;  %1431 = vmatpush3.bf16.msra.mxu1 %v696_v61 }
 0x395   : > { %1432 = vmatprep.subr.bf16.mxu1 %v1643_v3  ;;  %1441 = vmatpush3.bf16.msra.mxu0 %v704_v35 }
 0x396   : > { %1452 = vmatprep.subr.bf16.mxu0 %v1643_v3 }
 0x398   : > { %1433 = vmatpush3.bf16.msra.mxu1 %v697_v0 }
 0x399   : > { %1446 = vmatprep.subr.bf16.mxu1 %v1643_v3 }
 0x462   : > { %v664_v5 = vpop.f32.mrb[8].mxu0 }
 0x463   : > { %v1428_v7 = vpop.f32.mrb[9].mxu0 }
 0x464   : > { %v667_v8 = vpop.f32.mrb[10].mxu0 }
 0x465   : > { %v1429_v9 = vpop.f32.mrb[11].mxu0 }
 0x466   : > { %v620_v11 = vpop.f32.mrb[4].mxu1 }
 0x467   : > { %v665_v12 = vadd.f32 %v664_v5, %v620_v11  ;;  %v1422_v13 = vpop.f32.mrb[5].mxu1 }
 0x468   : > { %v623_v14 = vpop.f32.mrb[6].mxu1 }
 0x469   : > { %v677_v15 = vadd.f32 %v1331_v10, %v665_v12  ;;  %v668_v17 = vadd.f32 %v667_v8, %v623_v14  ;;  %v1423_v18 = vpop.f32.mrb[7].mxu1 }
 0x46b   : > { %v681_v19 = vmin.f32 %v677_v15, 0.0  ;;  %v678_v22 = vadd.f32 %v1331_v10, %v668_v17  ;;  %vm679_vm13 = vcmp.gt.f32.partialorder %v677_v15, 0.0 }
 0x46d   : > { %v683_v23 = vmul.f32 1.442695, %v681_v19  ;;  %v682_v24 = vmin.f32 %v678_v22, 0.0  ;;  %vm680_vm14 = vcmp.gt.f32.partialorder %v678_v22, 0.0 }
 0x46f   : > { %1553 = vpow2.f32 %v683_v23  ;;  %v685_v25 = vmul.f32 1.442695, %v682_v24 }
 0x471   : > { %1555 = vpow2.f32 %v685_v25 }
 0x479   : > { %v1554_v26 = vpop.eup %1553 }
 0x47a   : > { %v1332_v27 = vadd.f32 -1.0, %v1554_v26 }
 0x47b   : > { %v1556_v28 = vpop.eup %1555 }
 0x47c   : > { %v1333_v29 = vadd.f32 -1.0, %v1556_v28  ;;  %v689_v30 = vsel %vm679_vm13, %v677_v15, %v1332_v27 }
 0x47e   : > { %v690_v31 = vsel %vm680_vm14, %v678_v22, %v1333_v29 }
 0x47f   : > { %v710_v32 = vpack.c.bf16 %v690_v31, %v689_v30 }
 0x481   : > { %1435 = vmatmul.mubr.msk.bf16.vlgmr.msra.gmra.mrb[8].mxu1 %vm351_vm1, %v710_v32 }
 0x482   : > { %1448 = vmatprep.mubr.msk.bf16.mxu1 %vm1644_vm0, %v1643_v3 }
 0x554   : > { %v748_v36 = vpop.f32.mrb[8].mxu1 }
 0x555   : > { %v1436_v37 = vpop.f32.mrb[9].mxu1  ;;  %v889_v38 = vmul.f32 %v1786_v20, %v748_v36  ;;  %v937_v40 = vmul.f32 %v1789_v21, %v748_v36 }
 0x556   : > { %v751_v39 = vpop.f32.mrb[10].mxu1 }
 0x557   : > { %v755_v41 = vpack.c.bf16 %v751_v39, %v748_v36  ;;  %v890_v42 = vmul.f32 %v1786_v20, %v751_v39  ;;  %v938_v43 = vmul.f32 %v1789_v21, %v751_v39  ;;  %v1437_v44 = vpop.f32.mrb[11].mxu1  ;;  %v707_v20 = vpack.c.bf16 %v1342_v51, %v1342_v51 }
 0x559   : > { %v892_v46 = vpack.c.bf16 %v890_v42, %v889_v38  ;;  %v940_v49 = vpack.c.bf16 %v938_v43, %v937_v40  ;;  %1443 = vmatmul.mubr.msk.bf16.vlgmr.msra.gmra.mrb[12].mxu0 %vm351_vm1, %v755_v41  ;;  %v757_v50 = vsel %vm351_vm1, %v755_v41, 0 }
 0x55a   : > { %1447 = vmatpush3.bf16.xpose.msra.mxu1 %v757_v50  ;;  %1454 = vmatprep.mubr.msk.bf16.mxu0 %vm1644_vm0, %v1643_v3 }
 0x55b   : > { %1453 = vmatpush3.bf16.msra.mxu0 %v940_v49  ;;  %1458 = vmatprep.subr.bf16.mxu1 %v1643_v3 }
 0x561   : > { %1449 = vmatmul.mubr.msk.bf16.vlgmr.msra.gmra.mrb[12].mxu1 %vm351_vm1, %v707_v20 }
 0x562   : > { %1459 = vmatpush3.bf16.msra.mxu1 %v892_v46  ;;  %1460 = vmatprep.mubr.msk.bf16.mxu1 %vm1644_vm0, %v1643_v3 }
 0x62c   : > { %v793_v21 = vpop.f32.mrb[12].mxu0 }
 0x62d   : > { %845 = vperm.xlu1 %1534, %v793_v21   ;;  %v1444_v52 = vpop.f32.mrb[13].mxu0 }
 0x62e   : > { %v796_v53 = vpop.f32.mrb[14].mxu0 }
 0x62f   : > { %850 = vperm.xlu0 %1532, %v796_v53   ;;  %v1445_v54 = vpop.f32.mrb[15].mxu0 }
 0x631   : > { %1535 = vset.pattern.permute.xlu1 %v1645_v16 }
 0x632   : > { %894 = vperm.xlu1 %1535, %v793_v21  }
 0x633   : > { %1536 = vset.pattern.permute.xlu0 %v1645_v16 }
 0x634   : > { %v837_v55 = vpop.f32.mrb[12].mxu1 }
 0x635   : > { %v1450_v56 = vpop.f32.mrb[13].mxu1  ;;  %v856_v60 = vrot.slane %v837_v55, %v496_v47  ;;  %v904_v2 = vrot.slane %v837_v55, %v545_v48 }
 0x636   : > { %898 = vperm.xlu1 %1535, %v796_v53   ;;  %v840_v57 = vpop.f32.mrb[14].mxu1  ;;  %v1648_v56 = vmov 0.0|0.0  }
 0x637   : > { %v1451_v58 = vpop.f32.mrb[15].mxu1  ;;  %1478 = vmatprep.subr.bf16.mxu0 %v1648_v56  ;;  %1482 = vmatprep.subr.bf16.mxu1 %v1648_v56  ;;  %v1037_v57 = vld [vmem:[%s309_s22] sm:$0x1] }
 0x638   : > { %v1198_v58 = vmul.f32 %v1037_v57, %v1037_v57 }
 0x6ac   : > { %v846_v61 = vpop.permute.xlu1 %845 }
 0x6ad   : > { %v857_v62 = vadd.f32 %v856_v60, %v846_v61 }
 0x6ae   : > { %v851_v63 = vpop.permute.xlu0 %850 }
 0x6af   : > { %vm859_vm15 = vcmp.gt.f32.partialorder %v857_v62, 0.0  ;;  %v861_v0 = vmul.f32 0.2, %v857_v62  ;;  %v858_v1 = vadd.f32 %v856_v60, %v851_v63  ;;  %v1200_v60 = vsel %vm1199_vm5, %v1198_v58, 0.0 }
 0x6b1   : > { %vm860_vm2 = vcmp.gt.f32.partialorder %v858_v1, 0.0  ;;  %v862_v4 = vmul.f32 0.2, %v858_v1  ;;  %v895_v16 = vpop.permute.xlu1 %894  ;;  %v863_v5 = vsel %vm859_vm15, %v857_v62, %v861_v0 }
 0x6b2   : > { %v905_v7 = vadd.f32 %v904_v2, %v895_v16  ;;  %v865_v8 = vadd.f32 %v863_v5, %v1820_v59 }
 0x6b3   : > { %v864_v9 = vsel %vm860_vm2, %v858_v1, %v862_v4 }
 0x6b4   : > { %vm907_vm3 = vcmp.gt.f32.partialorder %v905_v7, 0.0  ;;  %v909_v10 = vmul.f32 0.2, %v905_v7  ;;  %v867_v47 = vsel %vm508_vm10, %v865_v8, -inf  ;;  %v866_v11 = vadd.f32 %v864_v9, %v1823_v6 }
 0x6b5   : > { %v899_v12 = vpop.permute.xlu1 %898  ;;  %868 = vmax.xlane.f32.xlu0 %v867_v47 }
 0x6b6   : > { %v906_v13 = vadd.f32 %v904_v2, %v899_v12  ;;  %v870_v45 = vsel %vm508_vm10, %v866_v11, -inf  ;;  %v911_v48 = vsel %vm907_vm3, %v905_v7, %v909_v10 }
 0x6b7   : > { %871 = vmax.xlane.f32.xlu1 %v870_v45  ;;  %v913_v14 = vadd.f32 %v911_v48, %v1820_v59 }
 0x6b8   : > { %vm908_vm4 = vcmp.gt.f32.partialorder %v906_v13, 0.0  ;;  %v910_v15 = vmul.f32 0.2, %v906_v13 }
 0x6b9   : > { %v915_v17 = vsel %vm508_vm10, %v913_v14, -inf }
 0x6ba   : > { %916 = vmax.xlane.f32.xlu0 %v915_v17  ;;  %v912_v18 = vsel %vm908_vm4, %v906_v13, %v910_v15  ;;  %v1649_v13 = vmov 1.0  }
 0x6bb   : > { %v914_v19 = vadd.f32 %v912_v18, %v1823_v6 }
 0x6bd   : > { %v918_v22 = vsel %vm508_vm10, %v914_v19, -inf }
 0x6be   : > { %919 = vmax.xlane.f32.xlu0 %v918_v22 }
 0x742   : > { %v869_v23 = vpop.xlane.xlu0 %868 }
 0x743   : > { %v873_v24 = vsub.f32 %v865_v8, %v869_v23 }
 0x744   : > { %v872_v25 = vpop.xlane.xlu1 %871 }
 0x745   : > { %v875_v26 = vmul.f32 1.442695, %v873_v24  ;;  %v874_v27 = vsub.f32 %v866_v11, %v872_v25 }
 0x747   : > { %1557 = vpow2.f32 %v875_v26  ;;  %v877_v28 = vmul.f32 1.442695, %v874_v27  ;;  %v917_v29 = vpop.xlane.xlu0 %916 }
 0x748   : > { %v921_v59 = vsub.f32 %v913_v14, %v917_v29 }
 0x749   : > { %1559 = vpow2.f32 %v877_v28 }
 0x74a   : > { %v923_v30 = vmul.f32 1.442695, %v921_v59 }
 0x74b   : > { %v920_v31 = vpop.xlane.xlu0 %919 }
 0x74c   : > { %1561 = vpow2.f32 %v923_v30  ;;  %v922_v32 = vsub.f32 %v914_v19, %v920_v31 }
 0x74e   : > { %v925_v33 = vmul.f32 1.442695, %v922_v32 }
 0x750   : > { %1563 = vpow2.f32 %v925_v33 }
 0x751   : > { %v1558_v6 = vpop.eup %1557 }
 0x752   : > { %v879_v34 = vsel %vm508_vm10, %v1558_v6, 0.0 }
 0x753   : > { %v1560_v35 = vpop.eup %1559  ;;  %880 = vadd.xlane.f32.xlu1 %v879_v34 }
 0x754   : > { %v882_v36 = vsel %vm508_vm10, %v1560_v35, 0.0 }
 0x755   : > { %883 = vadd.xlane.f32.xlu0 %v882_v36 }
 0x756   : > { %v1562_v37 = vpop.eup %1561 }
 0x757   : > { %v927_v38 = vsel %vm508_vm10, %v1562_v37, 0.0 }
 0x758   : > { %928 = vadd.xlane.f32.xlu1 %v927_v38 }
 0x75a   : > { %v1564_v39 = vpop.eup %1563 }
 0x75b   : > { %v930_v40 = vsel %vm508_vm10, %v1564_v39, 0.0 }
 0x75c   : > { %931 = vadd.xlane.f32.xlu0 %v930_v40  ;;  %1201 = vadd.xlane.f32.xlu1 %v1200_v60 }
 0x7e0   : > { %v881_v41 = vpop.xlane.xlu1 %880 }
 0x7e1   : > { %1565 = vrcp.f32 %v881_v41 }
 0x7e2   : > { %v884_v42 = vpop.xlane.xlu0 %883 }
 0x7e3   : > { %1567 = vrcp.f32 %v884_v42 }
 0x7e5   : > { %v929_v43 = vpop.xlane.xlu1 %928 }
 0x7e6   : > { %1569 = vrcp.f32 %v929_v43 }
 0x7e9   : > { %v932_v44 = vpop.xlane.xlu0 %931  ;;  %v1202_v45 = vpop.xlane.xlu1 %1201 }
 0x7ea   : > { %1571 = vrcp.f32 %v932_v44  ;;  %vm1212_vm6 = vcmp.eq.f32.partialorder %v1202_v45, inf  ;;  %v1215_v23 = vand.u32 2147483648, %v1202_v45  ;;  %vm1214_vm7 = vcmp.eq.f32.partialorder %v1202_v45, 0.0 }
 0x7eb   : > { %v1566_v46 = vpop.eup %1565  ;;  %1573 = vrsqrt.f32 %v1202_v45 }
 0x7ec   : > { %v887_v50 = vmul.f32 %v1566_v46, %v1558_v6 }
 0x7ed   : > { %v1568_v49 = vpop.eup %1567 }
 0x7ee   : > { %v888_v51 = vmul.f32 %v1568_v49, %v1560_v35 }
 0x7f0   : > { %v891_v20 = vpack.c.bf16 %v888_v51, %v887_v50  ;;  %v1570_v21 = vpop.eup %1569 }
 0x7f1   : > { %v935_v53 = vmul.f32 %v1570_v21, %v1562_v37 }
 0x7f2   : > { %1461 = vmatmul.mubr.msk.bf16.vlgmr.msra.gmra.mrb[16].mxu1 %vm508_vm10, %v891_v20 }
 0x7f3   : > { %1475 = vmatprep.mubr.msk.f32.mxu1 %vm1644_vm0, %v1643_v3 }
 0x7f4   : > { %v1572_v52 = vpop.eup %1571 }
 0x7f5   : > { %v936_v54 = vmul.f32 %v1572_v52, %v1564_v39  ;;  %v1574_v18 = vpop.eup %1573 }
 0x7f6   : > { %v1211_v19 = vmul.f32 %v1574_v18, %v1202_v45 }
 0x7f7   : > { %v939_v55 = vpack.c.bf16 %v936_v54, %v935_v53 }
 0x7f8   : > { %v1213_v24 = vsel %vm1212_vm6, %v1202_v45, %v1211_v19 }
 0x7f9   : > { %1455 = vmatmul.mubr.msk.bf16.vlgmr.msra.gmra.mrb[16].mxu0 %vm508_vm10, %v939_v55  ;;  %v1216_v28 = vsel %vm1214_vm7, %v1215_v23, %v1213_v24 }
 0x7fa   : > { %1468 = vmatprep.mubr.msk.f32.mxu0 %vm1644_vm0, %v1643_v3  ;;  %v1349_v3 = vld [vmem:[%s1979_s6 + $0x1] ss:$0 sm:$0xff]  ;;  %vm1480_vm0 = vmpackc.low %vm351_vm1, %vm351_vm1 }
 0x8c5   : > { %v1022_v61 = vpop.f32.mrb[16].mxu1 }
 0x8c6   : > { %v1462_v62 = vpop.f32.mrb[17].mxu1 }
 0x8c7   : > { %v1025_v63 = vpop.f32.mrb[18].mxu1 }
 0x8c8   : > { %v1463_v0 = vpop.f32.mrb[19].mxu1 }
 0x8cc   : > { %v978_v1 = vpop.f32.mrb[16].mxu0 }
 0x8cd   : > { %v1023_v2 = vadd.f32 %v1022_v61, %v978_v1  ;;  %v1456_v4 = vpop.f32.mrb[17].mxu0 }
 0x8ce   : > { %v981_v16 = vpop.f32.mrb[18].mxu0 }
 0x8cf   : > { %v1035_v5 = vadd.f32 %v1349_v3, %v1023_v2  ;;  %v1026_v7 = vadd.f32 %v1025_v63, %v981_v16  ;;  %v1457_v8 = vpop.f32.mrb[19].mxu0 }
 0x8d1   : > { %v1036_v9 = vadd.f32 %v1349_v3, %v1026_v7  ;;  %v1117_v10 = vmul.f32 %v1035_v5, %v1035_v5 }
 0x8d3   : > { %v1479_v47 = vpack.c.bf16 %v1036_v9, %v1035_v5  ;;  %v1118_v11 = vmul.f32 %v1036_v9, %v1036_v9 }
 0x8d5   : > { %v1483_v12 = vpack.c.bf16 %v1118_v11, %v1117_v10  ;;  %1481 = vmatpush3.bf16.xpose.msk.msra.mxu0 %vm1480_vm0, %v1479_v47 }
 0x8d7   : > { %1485 = vmatpush3.bf16.xpose.msk.msra.mxu1 %vm1480_vm0, %v1483_v12 }
 0x8dc   : > { %1469 = vmatmul.mubr.msk.f32.vlgmr.msra.gmra.mrb[20].mxu0 %vm351_vm1, %v1037_v57 }
 0x8de   : > { %1476 = vmatmul.mubr.msk.f32.vlgmr.msra.gmra.mrb[20].mxu1 %vm351_vm1, %v1649_v13 }
 0x9af   : > { %v1113_v48 = vpop.f32.mrb[20].mxu0 }
 0x9b0   : > { %v1470_v14 = vpop.f32.mrb[21].mxu0 }
 0x9b1   : > { %v1194_v15 = vpop.f32.mrb[20].mxu1 }
 0x9b2   : > { %1575 = vrsqrt.f32 %v1194_v15  ;;  %v1477_v17 = vpop.f32.mrb[21].mxu1  ;;  %vm1205_vm8 = vcmp.eq.f32.partialorder %v1194_v15, inf  ;;  %v1208_v26 = vand.u32 2147483648, %v1194_v15  ;;  %vm1207_vm1 = vcmp.eq.f32.partialorder %v1194_v15, 0.0 }
 0x9bc   : > { %v1576_v22 = vpop.eup %1575 }
 0x9bd   : > { %v1204_v25 = vmul.f32 %v1576_v22, %v1194_v15 }
 0x9bf   : > { %v1206_v27 = vsel %vm1205_vm8, %v1194_v15, %v1204_v25 }
 0x9c0   : > { %v1209_v29 = vsel %vm1207_vm1, %v1208_v26, %v1206_v27 }
 0x9c1   : > { %v1217_v59 = vmul.f32 %v1216_v28, %v1209_v29 }
 0x9c3   : > { %v1218_v30 = vmax.f32 %v1217_v59, 1e-08 }
 0x9c5   : > { %1577 = vrcp.f32 %v1218_v30 }
 0x9cf   : > { %v1578_v31 = vpop.eup %1577 }
 0x9d0   : > { %v1220_v32 = vmul.f32 %v1578_v31, %v1113_v48 }
 0x9d2   : > { %v1356_v33 = vclamps-f32 %v1220_v32, 1.0 }
 0x9d4   : > { %v1223_v6 = vadd.f32 1.0, %v1356_v33 }
 0x9d6   : > { %v1224_v34 = vmul.f32 0.5, %v1223_v6 }
 0x9d8   : > { %1226 = vst.msk [vmem:[%s296_s13] sm:$0x1] %vm1225_vm9, %v1224_v34 }
 0x9d9   : > { %1592 = shalt.err (!%p1589_p3)
}
 0x9da   : > { %s1593_s22 = scalar_lea.hbm %s1931_s17, 16  ;;  %s1597_s8 = scalar_lea.hbm %s1980_s7, 32 }
 0x9db   : > { %p1594_p4 = scmp.ne.s32.totalorder %s1931_s17, %s1593_s22  ;;  %p1598_p9 = scmp.lt.u32.totalorder %s1931_s17, %s1980_s7 }
 0x9dc   : > { %p1599_p10 = scmp.lt.u32.totalorder %s1597_s8, %s1593_s22  ;;  %p1601_p12 = scmp.lt.u32.totalorder %s1593_s22, %s1931_s17 }
 0x9dd   : > { %p1595_p7 = pnand %p1594_p4, %p1729_p5 }
 0x9de   : > { %p1600_p11 = por %p1599_p10, %p1598_p9 }
 0x9df   : > { %p1596_p8 = pneg %p1595_p7 }
 0x9e0   : > { %p1602_p13 = por %p1601_p12, %p1600_p11 }
 0x9e2   : > { %p1603_p0 = pnand %p1602_p13, %p1596_p8 }
 0x9e4   : > { %1606 = shalt.err (!%p1603_p0)
}
 0x9e5   : > { %1486 = dma.vmem_to_hbm [thread:$0]  (%p1729_p5), %s1933_s14, 16, %s1931_s17, %s1228_s18  }
 0x9e6 PF: > { %p1492_p1 = scmp.ge.s32.totalorder %s1641_s27, 2  ;;  %s1252_s15 = sand.u32 1, %s1629_s24  }
 0x9e7   : > { %s1253_s16 = scalar_lea.sflag [#allocation3], %s1252_s15 }
 0x9e8   : > { %p1489_p2 = pnand %p1492_p1, %p1733_p6 }
 0x9ea   : > { %1624 = dma.done.wait (!%p1489_p2), %s1253_s16, 16  }
 0x9eb   : > { %1626 = vsyncadd (!%p1489_p2), %s1253_s16, 4294967280  ;;  %p17_p3 = scmp.ge.s32.totalorder %s1716_s30, 4   ;;  %s1983_s24 = smov %s1633_s25 }
 0x9ec   : > { %s1984_s25 = smov %s1637_s26  ;;  %s1985_s26 = smov %s1727_s10 }
 0x9ed   : > { %s1986_s27 = smov %s1716_s30  ;;  %19 = sbr.rel (!%p17_p3) target bundleno = 3 (0x3), region = 93 }
 0x9f4   :  { %1257 = vsyncpa [#allocation3], 1 }
 0x9f5   :  { %1259 = vsyncpa [#allocation3 + $0x1], 1 }

</bundles_post_ra>
